<compile_context>
chip_gen: v6e
topology: v6e:2x2x1
jax: 0.10.0
libtpu: 0.0.40
codegen_flags: <defaults>
</compile_context>

<pallas_src>
import jax
import jax.numpy as jnp
from jax import lax
from jax.experimental import pallas as pl
from jax.experimental.pallas import tpu as pltpu


def _proj_kernel(x_ref, w_ref, b_ref, o_ref):
    """One grid step: project nb batch elements x ts spatial positions.

    x_ref: (nb, C, ts) f32  -- native channel-major layout; cast to bf16 here
                               on the VPU (no wrapper-side cast pass over HBM).
    w_ref: (C, N)      bf16 -- VMEM-resident across the grid (constant index_map).
    b_ref: (1, N)      f32  -- resident.
    o_ref: (nb, ts, N) out dtype.
    """
    w = w_ref[...]
    b = b_ref[...]
    # Static unroll over the folded batch block (nb is small).
    for j in range(x_ref.shape[0]):
        x = x_ref[j].astype(jnp.bfloat16)                  # (C, ts)
        acc = lax.dot_general(                             # contract channels:
            x, w,                                          # out = x.T @ W (MXU)
            dimension_numbers=(((0,), (0,)), ((), ())),
            preferred_element_type=jnp.float32,            # f32 accumulation
        )
        o_ref[j] = (acc + b).astype(o_ref.dtype)


def _choose_tiling(n, s):
    """Pick (nb, ts, s_pad): nb divides n, ts divides s_pad, s_pad >= s.

    Prefers ts as an exact divisor of s (no padding). For small spatial extents
    the whole extent is one tile and the batch is folded (nb > 1) to amortize
    per-grid-step overhead while keeping >= 2 grid steps for v7x's 2 TCs.
    """
    # Lane/MXU-friendly 128-multiple spatial tiles, capped at 512 for VMEM.
    for ts in (512, 384, 256, 128):
        if s % ts == 0 and s // ts >= 2:
            return 1, ts, s
    if s <= 1024:
        nb = 1
        for cand in range(1, n + 1):
            if n % cand == 0 and cand * s <= 512 and (n // cand) >= 2:
                nb = max(nb, cand)
        return nb, s, s
    # Rare fallback: large ragged spatial extent -> pad to a 512 multiple.
    # Zero padding keeps the sliced-off rows inert (bias-only, discarded).
    s_pad = pl.cdiv(s, 512) * 512
    return 1, 512, s_pad


def visual_embedding_forward(v, weight, bias, *, out_dtype=jnp.float32):
    """VisualEmbedding.forward.

    v:      (n, c, h, w) float32, c == 2048
    weight: (c, d_model)  (transposed torch Linear weight, i.e. W.T)
    bias:   (d_model,)
    returns (n, h*w, d_model) in out_dtype.
    """
    n, c, h, w = v.shape
    s = h * w
    d_model = weight.shape[1]

    # torch v.view(n, c, h*w): pure metadata reshape, no HBM transpose.
    x = v.reshape(n, c, s)

    nb, ts, s_pad = _choose_tiling(n, s)
    if s_pad != s:
        x = jnp.pad(x, ((0, 0), (0, 0), (0, s_pad - s)))

    # Small one-time casts (weight is only 2048 x d_model); the big activation
    # stream stays f32 in HBM and is cast in-kernel.
    w_bf16 = weight.astype(jnp.bfloat16)
    b2d = bias.reshape(1, d_model).astype(jnp.float32)

    grid = (n // nb, s_pad // ts)

    out = pl.pallas_call(
        _proj_kernel,
        out_shape=jax.ShapeDtypeStruct((n, s_pad, d_model), out_dtype),
        grid_spec=pltpu.PrefetchScalarGridSpec(
            num_scalar_prefetch=0,
            grid=grid,
            in_specs=[
                # nb batch elements, all 2048 channels, ts spatial columns.
                pl.BlockSpec((nb, c, ts), lambda bi, si: (bi, 0, si)),
                # Whole weight resident (constant index_map -> fetched once).
                pl.BlockSpec((c, d_model), lambda bi, si: (0, 0)),
                # Bias resident.
                pl.BlockSpec((1, d_model), lambda bi, si: (0, 0)),
            ],
            out_specs=pl.BlockSpec((nb, ts, d_model), lambda bi, si: (bi, si, 0)),
        ),
        compiler_params=pltpu.CompilerParams(
            dimension_semantics=("parallel", "parallel"),
            vmem_limit_bytes=48 * 1024 * 1024,
        ),
        cost_estimate=pl.CostEstimate(
            flops=2 * n * s_pad * c * d_model,
            transcendentals=0,
            bytes_accessed=(
                n * s_pad * c * 4                                      # f32 activations
                + c * d_model * 2                                      # bf16 weight (once)
                + n * s_pad * d_model * jnp.dtype(out_dtype).itemsize  # output
                + d_model * 4                                          # bias
            ),
        ),
    )(x, w_bf16, b2d)

    if s_pad != s:
        out = out[:, :s, :]
    return out


if __name__ == "__main__":
    # Small shapes consistent with the module (c is fixed at 2048 by nn.Linear).
    # Note: with d_model=32 the output lane dim < 128 -> masked stores; this is
    # only the toy test size, production d_model >= 512 is lane-dense.
    n, c, h, w = 2, 2048, 4, 4
    d_model = 32

    key = jax.random.PRNGKey(0)
    k_v, k_w, k_b = jax.random.split(key, 3)

    v = jax.random.normal(k_v, (n, c, h, w), dtype=jnp.float32)
    # Torch Linear: weight (out, in), bias (out,).
    weight_torch_layout = jax.random.normal(k_w, (d_model, c), dtype=jnp.float32) * 0.02
    bias = jax.random.normal(k_b, (d_model,), dtype=jnp.float32) * 0.02
    weight = weight_torch_layout.T  # (c, d_model): kernel computes x.T @ W

    out = visual_embedding_forward(v, weight, bias)
    out = jax.block_until_ready(out)

    # Plain-JAX f32 reference (same math path as the PyTorch forward).
    ref = v.reshape(n, c, h * w).transpose(0, 2, 1) @ weight + bias
    assert out.shape == (n, h * w, d_model)
    # Loose tolerance: operands go through bf16 on the MXU (f32 accumulation).
    assert jnp.allclose(out, ref, atol=5e-2, rtol=5e-2)

    # TODO(synk): nn.Dropout(dropout) exists in __init__ but is never applied in
    # forward(), so it is intentionally not implemented here.
    print("KERNEL_OK")
</pallas_src>

<mosaic_0001>
module attributes {stable_mosaic.version = 11 : i64} {
  func.func @_proj_kernel(%arg0: i32, %arg1: i32, %arg2: memref<1x2048x16xf32, #tpu.memory_space<vmem>>, %arg3: memref<2048x32xbf16, #tpu.memory_space<vmem>>, %arg4: memref<1x32xf32, #tpu.memory_space<vmem>>, %arg5: memref<1x16x32xf32, #tpu.memory_space<vmem>>) attributes {dimension_semantics = [#tpu.dimension_semantics<parallel>, #tpu.dimension_semantics<parallel>], iteration_bounds = array<i64: 2, 1>, scalar_prefetch = 0 : i64, scratch_operands = 0 : i64, tpu.core_type = #tpu.core_type<tc>, window_params = [{transform_indices = @transform_0, window_bounds = array<i64: 1, 2048, 16>}, {pipeline_mode = #tpu.pipeline_mode<synchronous>, transform_indices = @transform_1, window_bounds = array<i64: 2048, 32>}, {pipeline_mode = #tpu.pipeline_mode<synchronous>, transform_indices = @transform_2, window_bounds = array<i64: 1, 32>}, {transform_indices = @transform_3, window_bounds = array<i64: 1, 16, 32>}]} {
    %c0 = arith.constant 0 : index
    %c0_0 = arith.constant 0 : index
    %0 = vector.load %arg3[%c0, %c0_0] : memref<2048x32xbf16, #tpu.memory_space<vmem>>, vector<2048x32xbf16>
    %c0_1 = arith.constant 0 : index
    %c0_2 = arith.constant 0 : index
    %1 = vector.load %arg4[%c0_1, %c0_2] : memref<1x32xf32, #tpu.memory_space<vmem>>, vector<1x32xf32>
    %c0_3 = arith.constant 0 : index
    %c0_4 = arith.constant 0 : index
    %c0_5 = arith.constant 0 : index
    %2 = vector.load %arg2[%c0_3, %c0_4, %c0_5] : memref<1x2048x16xf32, #tpu.memory_space<vmem>>, vector<1x2048x16xf32>
    %3 = vector.shape_cast %2 : vector<1x2048x16xf32> to vector<2048x16xf32>
    %4 = arith.truncf %3 : vector<2048x16xf32> to vector<2048x16xbf16>
    %cst = arith.constant dense<0.000000e+00> : vector<16x32xf32>
    %5 = tpu.matmul %4, %0, %cst {dimension_numbers = #tpu.dot_dimension_numbers<[0], [0], [1], [1], [0, 1, 1, 1], [], []>} : vector<2048x16xbf16>, vector<2048x32xbf16>, vector<16x32xf32> -> vector<16x32xf32>
    %6 = vector.broadcast %1 : vector<1x32xf32> to vector<16x32xf32>
    %7 = arith.addf %5, %6 : vector<16x32xf32>
    %c0_6 = arith.constant 0 : index
    %c0_7 = arith.constant 0 : index
    %c0_8 = arith.constant 0 : index
    %8 = vector.load %arg5[%c0_6, %c0_7, %c0_8] : memref<1x16x32xf32, #tpu.memory_space<vmem>>, vector<1x16x32xf32>
    %9 = vector.shape_cast %8 : vector<1x16x32xf32> to vector<16x32xf32>
    %10 = vector.shape_cast %7 : vector<16x32xf32> to vector<1x16x32xf32>
    tpu.vector_store %arg5[%c0_6, %c0_7, %c0_8], %10 {strides = array<i32>} : memref<1x16x32xf32, #tpu.memory_space<vmem>>, vector<1x16x32xf32>,
    return
  }
  func.func @transform_0(%arg0: i32, %arg1: i32) -> (i32, i32, i32) {
    %c0_i32 = arith.constant 0 : i32
    %c0_i32_0 = arith.constant 0 : i32
    return %arg0, %c0_i32, %arg1 : i32, i32, i32
  }
  func.func @transform_1(%arg0: i32, %arg1: i32) -> (i32, i32) {
    %c0_i32 = arith.constant 0 : i32
    %c0_i32_0 = arith.constant 0 : i32
    %c0_i32_1 = arith.constant 0 : i32
    return %c0_i32, %c0_i32_0 : i32, i32
  }
  func.func @transform_2(%arg0: i32, %arg1: i32) -> (i32, i32) {
    %c0_i32 = arith.constant 0 : i32
    %c0_i32_0 = arith.constant 0 : i32
    %c0_i32_1 = arith.constant 0 : i32
    return %c0_i32, %c0_i32_0 : i32, i32
  }
  func.func @transform_3(%arg0: i32, %arg1: i32) -> (i32, i32, i32) {
    %c0_i32 = arith.constant 0 : i32
    %c0_i32_0 = arith.constant 0 : i32
    return %arg0, %arg1, %c0_i32 : i32, i32, i32
  }
}

</mosaic_0001>

<bundles_post_ra>
// kernel: tpu_custom_call.1
= control target key start
LH: loop header
LB: loop body
LE: loop exit
PB: predicated region body
PF: predicated region fallthrough
CT: control target
= control target key end

     0   :  { %8 = vsyncpa [#allocation3], 0  ;;  %s3662_s0 = inlined_call_operand.vmem [shape: f32[2,2048,16], index: 0, kind: input, shape index: {}]   ;;  %s3663_s1 = inlined_call_operand.vmem [shape: bf16[2048,32], index: 1, kind: input, shape index: {}]   ;;  %s3664_s2 = inlined_call_operand.vmem [shape: f32[1,32], index: 2, kind: input, shape index: {}]   ;;  %s3665_s3 = inlined_call_operand.hbm [shape: f32[2,16,32], index: 3, kind: output, shape index: {}]  }
   0x1   :  { %10 = vsyncpa [#allocation3 + $0x1], 0  ;;  %s2899_s12 = smov 0   ;;  %s2901_s13 = smov 0  }
   0x2   :  { %s2903_s14 = smov 0   ;;  %s2905_s15 = smov 0  }
   0x3   :  { %s2907_s16 = smov 0   ;;  %s2909_s17 = smov 0  }
   0x4 LB: > { %s2293_s18 = sadd.s32 4294967295, %s2874_s17   ;;  %s2294_s19 = sadd.s32 4294967294, %s2874_s17   ;;  %s2874_s17 = sphi %s2909_s17, %s16_s17   ;;  %s2870_s16 = sphi %s2907_s16, %s3672_s16   ;;  %s2866_s15 = sphi %s2905_s15, %s3671_s15   ;;  %s2862_s14 = sphi %s2903_s14, %s3670_s14   ;;  %s2858_s13 = sphi %s2901_s13, %s3669_s13   ;;  %s2854_s12 = sphi %s2899_s12, %s3668_s12  }
   0x5   : > { %s28_s20 = sadd.s32 1, %s2870_s16  ;;  %s107_s21 = sadd.s32 1, %s2862_s14 }
   0x6   : > { %p30_p0 = scmp.ge.s32.totalorder %s28_s20, 2  ;;  %p117_p1 = scmp.ne.s32.totalorder %s2862_s14, %s2858_s13 }
   0x7   : > { %p118_p2 = scmp.eq.s32.totalorder %s2293_s18, 1  ;;  %p123_p3 = scmp.ne.s32.totalorder %s2858_s13, %s2854_s12 }
   0x8   : > { %s3674_s20 = smov (%p30_p0, %s28_s20), 0  ;;  %p124_p5 = scmp.eq.s32.totalorder %s2294_s19, 1 }
   0x9   : > { %p2939_p4 = por %p118_p2, %p117_p1  ;;  %s102_s23 = ssub.s32 %s2870_s16, %s3674_s20 }
   0xa   : > { %p2297_p6 = scmp.ge.s32.totalorder %s2874_s17, 1  ;;  %p105_p7 = scmp.eq.s32.totalorder %s102_s23, 0 }
   0xb   : > { %p2946_p8 = por %p124_p5, %p123_p3  ;;  %p159_p9 = scmp.lt.s32.totalorder %s2874_s17, 3 }
   0xc   : > { %s2952_s25 = scalar_select %p105_p7, %s2862_s14, %s107_s21  }
   0xd   : > { %p160_p10 = pnand %p2297_p6, %p159_p9 }
   0xe   : > { %p186_p11 = scmp.lt.s32.totalorder (!%p160_p10), %s2866_s15, 1  ;;  %s2436_s7 = sshll.u32 (!%p160_p10), %s2866_s15, 8 }
   0xf   : > { %163 = sbr.rel (%p160_p10) target bundleno = 568 (0x238), region = 32  ;;  %s3611_s10 = scalar_lea.hbm (!%p160_p10), %s3665_s3, %s2436_s7 }
  0x10   : > { %s2876_s18 = smov (!%p160_p10), [#allocation2]  }
  0x11   : > { %s2802_s19 = sshll.u32 (!%p160_p10), %s2876_s18, 4  ;;  %s2803_s19 = int_to_ptr.vmem [resolvable:$false] %s2802_s19 }
  0x12   : > { %s2804_s21 = scalar_lea.vmem (!%p160_p10), %s2803_s19, 512 }
  0x14   : > { %s187_s26 = scalar_select %p186_p11, %s2866_s15, 1  ;;  %vm2195_vm0 = vcmask 261120  }
  0x16   : > { %s2435_s27 = sshll.u32 %s187_s26, 11 }
  0x17   : > { %s2959_s30 = scalar_lea.vmem %s3662_s0, %s2435_s27 }
  0x18   : > { %v469_v0 = vld [vmem:[%s2959_s30 + $0x80] sm:$0xff]  ;;  %v470_v1 = vld [vmem:[%s2959_s30 + $0x88] sm:$0xff]  ;;  %v471_v5 = vld [vmem:[%s2959_s30 + $0x90] sm:$0xff] }
  0x19   : > { %v453_v2 = vld [vmem:[%s2959_s30] sm:$0xff]  ;;  %v717_v3 = vpack.c.bf16 %v470_v1, %v469_v0  ;;  %v454_v4 = vld [vmem:[%s2959_s30 + $0x8] sm:$0xff]  ;;  %v472_v6 = vld [vmem:[%s2959_s30 + $0x98] sm:$0xff] }
  0x1a   : > { %v709_v7 = vpack.c.bf16 %v454_v4, %v453_v2  ;;  %v455_v8 = vld [vmem:[%s2959_s30 + $0x10] sm:$0xff]  ;;  %v456_v9 = vld [vmem:[%s2959_s30 + $0x18] sm:$0xff]  ;;  %v718_v10 = vpack.c.bf16 %v472_v6, %v471_v5  ;;  %v473_v12 = vld [vmem:[%s2959_s30 + $0xa0] sm:$0xff] }
  0x1b   : > { %859 = vxpose.xlu0.c.b16.start [1/8] (narrow) %v717_v3, 16  ;;  %v710_v11 = vpack.c.bf16 %v456_v9, %v455_v8  ;;  %v474_v13 = vld [vmem:[%s2959_s30 + $0xa8] sm:$0xff]  ;;  %v457_v14 = vld [vmem:[%s2959_s30 + $0x20] sm:$0xff]  ;;  %v475_v18 = vld [vmem:[%s2959_s30 + $0xb0] sm:$0xff] }
  0x1c   : > { %843 = vxpose.xlu1.c.b16.start [1/8] (narrow) %v709_v7, 16  ;;  %v458_v15 = vld [vmem:[%s2959_s30 + $0x28] sm:$0xff]  ;;  %v719_v16 = vpack.c.bf16 %v474_v13, %v473_v12  ;;  %v476_v19 = vld [vmem:[%s2959_s30 + $0xb8] sm:$0xff]  ;;  %v459_v20 = vld [vmem:[%s2959_s30 + $0x30] sm:$0xff] }
  0x1d   : > { %v711_v17 = vpack.c.bf16 %v458_v15, %v457_v14  ;;  %v460_v21 = vld [vmem:[%s2959_s30 + $0x38] sm:$0xff]  ;;  %v720_v22 = vpack.c.bf16 %v476_v19, %v475_v18  ;;  %v477_v24 = vld [vmem:[%s2959_s30 + $0xc0] sm:$0xff]  ;;  %v478_v25 = vld [vmem:[%s2959_s30 + $0xc8] sm:$0xff] }
  0x1e   : > { %v712_v23 = vpack.c.bf16 %v460_v21, %v459_v20  ;;  %v461_v26 = vld [vmem:[%s2959_s30 + $0x40] sm:$0xff]  ;;  %v462_v27 = vld [vmem:[%s2959_s30 + $0x48] sm:$0xff]  ;;  %v721_v28 = vpack.c.bf16 %v478_v25, %v477_v24  ;;  %v479_v30 = vld [vmem:[%s2959_s30 + $0xd0] sm:$0xff] }
  0x1f   : > { %860 = vxpose.xlu0.c.b16.cont [2/8] (narrow) %v718_v10, 16  ;;  %v713_v29 = vpack.c.bf16 %v462_v27, %v461_v26  ;;  %v480_v31 = vld [vmem:[%s2959_s30 + $0xd8] sm:$0xff]  ;;  %v463_v32 = vld [vmem:[%s2959_s30 + $0x50] sm:$0xff]  ;;  %v481_v36 = vld [vmem:[%s2959_s30 + $0xe0] sm:$0xff] }
  0x20   : > { %844 = vxpose.xlu1.c.b16.cont [2/8] (narrow) %v710_v11, 16  ;;  %v464_v33 = vld [vmem:[%s2959_s30 + $0x58] sm:$0xff]  ;;  %v722_v34 = vpack.c.bf16 %v480_v31, %v479_v30  ;;  %v482_v37 = vld [vmem:[%s2959_s30 + $0xe8] sm:$0xff]  ;;  %v465_v38 = vld [vmem:[%s2959_s30 + $0x60] sm:$0xff] }
  0x21   : > { %v714_v35 = vpack.c.bf16 %v464_v33, %v463_v32  ;;  %v466_v39 = vld [vmem:[%s2959_s30 + $0x68] sm:$0xff]  ;;  %v723_v40 = vpack.c.bf16 %v482_v37, %v481_v36  ;;  %v483_v42 = vld [vmem:[%s2959_s30 + $0xf0] sm:$0xff]  ;;  %v484_v43 = vld [vmem:[%s2959_s30 + $0xf8] sm:$0xff] }
  0x22   : > { %v715_v41 = vpack.c.bf16 %v466_v39, %v465_v38  ;;  %v467_v44 = vld [vmem:[%s2959_s30 + $0x70] sm:$0xff]  ;;  %v468_v45 = vld [vmem:[%s2959_s30 + $0x78] sm:$0xff]  ;;  %v724_v46 = vpack.c.bf16 %v484_v43, %v483_v42  ;;  %v501_v48 = vld [vmem:[%s2959_s30 + $0x180] sm:$0xff] }
  0x23   : > { %861 = vxpose.xlu0.c.b16.cont [3/8] (narrow) %v719_v16, 16  ;;  %v716_v47 = vpack.c.bf16 %v468_v45, %v467_v44  ;;  %v502_v49 = vld [vmem:[%s2959_s30 + $0x188] sm:$0xff]  ;;  %v485_v50 = vld [vmem:[%s2959_s30 + $0x100] sm:$0xff]  ;;  %v503_v54 = vld [vmem:[%s2959_s30 + $0x190] sm:$0xff] }
  0x24   : > { %845 = vxpose.xlu1.c.b16.cont [3/8] (narrow) %v711_v17, 16  ;;  %v486_v51 = vld [vmem:[%s2959_s30 + $0x108] sm:$0xff]  ;;  %v733_v52 = vpack.c.bf16 %v502_v49, %v501_v48  ;;  %v504_v55 = vld [vmem:[%s2959_s30 + $0x198] sm:$0xff]  ;;  %v487_v56 = vld [vmem:[%s2959_s30 + $0x110] sm:$0xff] }
  0x25   : > { %v725_v53 = vpack.c.bf16 %v486_v51, %v485_v50  ;;  %v488_v57 = vld [vmem:[%s2959_s30 + $0x118] sm:$0xff]  ;;  %v734_v58 = vpack.c.bf16 %v504_v55, %v503_v54  ;;  %v505_v60 = vld [vmem:[%s2959_s30 + $0x1a0] sm:$0xff]  ;;  %v506_v61 = vld [vmem:[%s2959_s30 + $0x1a8] sm:$0xff] }
  0x26   : > { %v726_v59 = vpack.c.bf16 %v488_v57, %v487_v56  ;;  %v489_v62 = vld [vmem:[%s2959_s30 + $0x120] sm:$0xff]  ;;  %v490_v63 = vld [vmem:[%s2959_s30 + $0x128] sm:$0xff]  ;;  %v735_v0 = vpack.c.bf16 %v506_v61, %v505_v60  ;;  %v507_v2 = vld [vmem:[%s2959_s30 + $0x1b0] sm:$0xff] }
  0x27   : > { %862 = vxpose.xlu0.c.b16.cont [4/8] (narrow) %v720_v22, 16  ;;  %v727_v1 = vpack.c.bf16 %v490_v63, %v489_v62  ;;  %v508_v3 = vld [vmem:[%s2959_s30 + $0x1b8] sm:$0xff]  ;;  %v491_v4 = vld [vmem:[%s2959_s30 + $0x130] sm:$0xff]  ;;  %v509_v8 = vld [vmem:[%s2959_s30 + $0x1c0] sm:$0xff] }
  0x28   : > { %846 = vxpose.xlu1.c.b16.cont [4/8] (narrow) %v712_v23, 16  ;;  %v492_v5 = vld [vmem:[%s2959_s30 + $0x138] sm:$0xff]  ;;  %v736_v6 = vpack.c.bf16 %v508_v3, %v507_v2  ;;  %v510_v9 = vld [vmem:[%s2959_s30 + $0x1c8] sm:$0xff]  ;;  %v493_v11 = vld [vmem:[%s2959_s30 + $0x140] sm:$0xff] }
  0x29   : > { %v728_v7 = vpack.c.bf16 %v492_v5, %v491_v4  ;;  %v2670_v10 = vld [vmem:[%s3663_s1 + $0x78] sm:$0xff]   ;;  %v494_v12 = vld [vmem:[%s2959_s30 + $0x148] sm:$0xff]  ;;  %v2672_v14 = vld [vmem:[%s3663_s1 + $0x70] sm:$0xff]   ;;  %v737_v15 = vpack.c.bf16 %v510_v9, %v509_v8 }
  0x2a   : > { %v2671_v13 = vld [vmem:[%s3663_s1 + $0x38] sm:$0xff]   ;;  %2437 = vmatprep.subr.bf16.mxu0 %v2670_v10  ;;  %v2673_v16 = vld [vmem:[%s3663_s1 + $0x30] sm:$0xff]   ;;  %v729_v17 = vpack.c.bf16 %v494_v12, %v493_v11  ;;  %v2674_v20 = vld [vmem:[%s3663_s1 + $0x68] sm:$0xff]  }
  0x2b   : > { %863 = vxpose.xlu0.c.b16.cont [5/8] (narrow) %v721_v28, 16  ;;  %2438 = vmatpush3.bf16.msra.mxu0 %v2671_v13  ;;  %v511_v18 = vld [vmem:[%s2959_s30 + $0x1d0] sm:$0xff]  ;;  %v512_v19 = vld [vmem:[%s2959_s30 + $0x1d8] sm:$0xff]  ;;  %v513_v23 = vld [vmem:[%s2959_s30 + $0x1e0] sm:$0xff] }
  0x2c   : > { %847 = vxpose.xlu1.c.b16.cont [5/8] (narrow) %v713_v29, 16  ;;  %2439 = vmatprep.subr.bf16.mxu0 %v2672_v14  ;;  %v495_v21 = vld [vmem:[%s2959_s30 + $0x150] sm:$0xff]  ;;  %v496_v22 = vld [vmem:[%s2959_s30 + $0x158] sm:$0xff]  ;;  %v738_v24 = vpack.c.bf16 %v512_v19, %v511_v18  ;;  %v514_v25 = vld [vmem:[%s2959_s30 + $0x1e8] sm:$0xff] }
  0x2d   : > { %v2675_v26 = vld [vmem:[%s3663_s1 + $0x28] sm:$0xff]   ;;  %v730_v27 = vpack.c.bf16 %v496_v22, %v495_v21  ;;  %v2676_v28 = vld [vmem:[%s3663_s1 + $0x60] sm:$0xff]   ;;  %v515_v31 = vld [vmem:[%s2959_s30 + $0x1f0] sm:$0xff]  ;;  %v739_v32 = vpack.c.bf16 %v514_v25, %v513_v23 }
  0x2e   : > { %v497_v29 = vld [vmem:[%s2959_s30 + $0x160] sm:$0xff]  ;;  %v498_v30 = vld [vmem:[%s2959_s30 + $0x168] sm:$0xff]  ;;  %v516_v33 = vld [vmem:[%s2959_s30 + $0x1f8] sm:$0xff] }
  0x2f   : > { %864 = vxpose.xlu0.c.b16.cont [6/8] (narrow) %v722_v34, 16  ;;  %2440 = vmatpush3.bf16.msra.mxu0 %v2673_v16  ;;  %v2677_v34 = vld [vmem:[%s3663_s1 + $0x20] sm:$0xff]   ;;  %v499_v36 = vld [vmem:[%s2959_s30 + $0x170] sm:$0xff]  ;;  %v2678_v37 = vld [vmem:[%s3663_s1 + $0x58] sm:$0xff]  }
  0x30   : > { %848 = vxpose.xlu1.c.b16.cont [6/8] (narrow) %v714_v35, 16  ;;  %2441 = vmatprep.subr.bf16.mxu0 %v2674_v20  ;;  %v731_v35 = vpack.c.bf16 %v498_v30, %v497_v29  ;;  %v500_v38 = vld [vmem:[%s2959_s30 + $0x178] sm:$0xff]  ;;  %v533_v39 = vld [vmem:[%s2959_s30 + $0x280] sm:$0xff]  ;;  %v534_v43 = vld [vmem:[%s2959_s30 + $0x288] sm:$0xff] }
  0x31   : > { %v732_v42 = vpack.c.bf16 %v500_v38, %v499_v36  ;;  %v2680_v44 = vld [vmem:[%s3663_s1 + $0x50] sm:$0xff]   ;;  %v517_v45 = vld [vmem:[%s2959_s30 + $0x200] sm:$0xff]  ;;  %v536_v48 = vld [vmem:[%s2959_s30 + $0x298] sm:$0xff]  ;;  %v749_v49 = vpack.c.bf16 %v534_v43, %v533_v39 }
  0x32   : > { %v519_v50 = vld [vmem:[%s2959_s30 + $0x210] sm:$0xff]  ;;  %v520_v51 = vld [vmem:[%s2959_s30 + $0x218] sm:$0xff]  ;;  %v2682_v54 = vld [vmem:[%s3663_s1 + $0x48] sm:$0xff]  }
  0x33   : > { %865 = vxpose.xlu0.c.b16.cont [7/8] (narrow) %v723_v40, 16  ;;  %2442 = vmatpush3.bf16.msra.mxu0 %v2675_v26  ;;  %v740_v40 = vpack.c.bf16 %v516_v33, %v515_v31  ;;  %v2686_v55 = vld [vmem:[%s3663_s1 + $0xf8] sm:$0xff]   ;;  %v537_v56 = vld [vmem:[%s2959_s30 + $0x2a0] sm:$0xff]  ;;  %v538_v57 = vld [vmem:[%s2959_s30 + $0x2a8] sm:$0xff]  ;;  %v742_v61 = vpack.c.bf16 %v520_v51, %v519_v50 }
  0x34   : > { %849 = vxpose.xlu1.c.b16.cont [7/8] (narrow) %v715_v41, 16  ;;  %2443 = vmatprep.subr.bf16.mxu0 %v2676_v28  ;;  %v2679_v41 = vld [vmem:[%s3663_s1 + $0x18] sm:$0xff]   ;;  %v521_v62 = vld [vmem:[%s2959_s30 + $0x220] sm:$0xff]  ;;  %v2689_v4 = vld [vmem:[%s3663_s1 + $0xf0] sm:$0xff]   ;;  %v751_v5 = vpack.c.bf16 %v538_v57, %v537_v56 }
  0x35   : > { %v2687_v60 = vld [vmem:[%s3663_s1 + $0xb8] sm:$0xff]   ;;  %v2684_v63 = vld [vmem:[%s3663_s1 + $0x40] sm:$0xff]   ;;  %2459 = vmatprep.subr.bf16.mxu1 %v2686_v55  ;;  %v2691_v8 = vld [vmem:[%s3663_s1 + $0xb0] sm:$0xff]  }
  0x36   : > { %v540_v2 = vld [vmem:[%s2959_s30 + $0x2b8] sm:$0xff]  ;;  %v2685_v3 = vld [vmem:[%s3663_s1] sm:$0xff]   ;;  %2460 = vmatpush3.bf16.msra.mxu1 %v2687_v60  ;;  %v523_v9 = vld [vmem:[%s2959_s30 + $0x230] sm:$0xff] }
  0x37   : > { %866 = vxpose.xlu0.c.b16.end [8/8] (narrow) %v724_v46, 16  ;;  %2444 = vmatpush3.bf16.msra.mxu0 %v2677_v34  ;;  %v518_v46 = vld [vmem:[%s2959_s30 + $0x208] sm:$0xff]  ;;  %v524_v10 = vld [vmem:[%s2959_s30 + $0x238] sm:$0xff]  ;;  %v541_v11 = vld [vmem:[%s2959_s30 + $0x2c0] sm:$0xff] }
  0x38   : > { %850 = vxpose.xlu1.c.b16.end [8/8] (narrow) %v716_v47, 16  ;;  %2445 = vmatprep.subr.bf16.mxu0 %v2678_v37  ;;  %v535_v47 = vld [vmem:[%s2959_s30 + $0x290] sm:$0xff]  ;;  %v542_v13 = vld [vmem:[%s2959_s30 + $0x2c8] sm:$0xff]  ;;  %v525_v16 = vld [vmem:[%s2959_s30 + $0x240] sm:$0xff] }
  0x39   : > { %2461 = vmatprep.subr.bf16.mxu1 %v2689_v4  ;;  %v2693_v14 = vld [vmem:[%s3663_s1 + $0xe8] sm:$0xff]   ;;  %v543_v18 = vld [vmem:[%s2959_s30 + $0x2d0] sm:$0xff]  ;;  %v753_v20 = vpack.c.bf16 %v542_v13, %v541_v11  ;;  %v544_v21 = vld [vmem:[%s2959_s30 + $0x2d8] sm:$0xff] }
  0x3a   : > { %2462 = vmatpush3.bf16.msra.mxu1 %v2691_v8  ;;  %v2695_v19 = vld [vmem:[%s3663_s1 + $0xa8] sm:$0xff]   ;;  %v2697_v23 = vld [vmem:[%s3663_s1 + $0xe0] sm:$0xff]   ;;  %v528_v25 = vld [vmem:[%s2959_s30 + $0x258] sm:$0xff] }
  0x3b   : > { %891 = vxpose.xlu0.c.b16.start [1/8] (narrow) %v733_v52, 16  ;;  %2446 = vmatpush3.bf16.msra.mxu0 %v2679_v41  ;;  %v2681_v52 = vld [vmem:[%s3663_s1 + $0x10] sm:$0xff]   ;;  %v545_v26 = vld [vmem:[%s2959_s30 + $0x2e0] sm:$0xff]  ;;  %v546_v28 = vld [vmem:[%s2959_s30 + $0x2e8] sm:$0xff] }
  0x3c   : > { %875 = vxpose.xlu1.c.b16.start [1/8] (narrow) %v725_v53, 16  ;;  %v741_v53 = vpack.c.bf16 %v518_v46, %v517_v45  ;;  %2447 = vmatprep.subr.bf16.mxu0 %v2680_v44  ;;  %v2699_v29 = vld [vmem:[%s3663_s1 + $0xa0] sm:$0xff]   ;;  %v547_v33 = vld [vmem:[%s2959_s30 + $0x2f0] sm:$0xff]  ;;  %v2701_v34 = vld [vmem:[%s3663_s1 + $0xd8] sm:$0xff]  }
  0x3d   : > { %2463 = vmatprep.subr.bf16.mxu1 %v2693_v14  ;;  %v529_v31 = vld [vmem:[%s2959_s30 + $0x260] sm:$0xff]  ;;  %v548_v36 = vld [vmem:[%s2959_s30 + $0x2f8] sm:$0xff]  ;;  %v531_v39 = vld [vmem:[%s2959_s30 + $0x270] sm:$0xff] }
  0x3e   : > { %2464 = vmatpush3.bf16.msra.mxu1 %v2695_v19  ;;  %v2703_v38 = vld [vmem:[%s3663_s1 + $0x98] sm:$0xff]   ;;  %v565_v41 = vld [vmem:[%s2959_s30 + $0x380] sm:$0xff]  ;;  %v566_v43 = vld [vmem:[%s2959_s30 + $0x388] sm:$0xff] }
  0x3f   : > { %892 = vxpose.xlu0.c.b16.cont [2/8] (narrow) %v734_v58, 16  ;;  %v2683_v58 = vld [vmem:[%s3663_s1 + $0x8] sm:$0xff]   ;;  %2448 = vmatpush3.bf16.msra.mxu0 %v2681_v52  ;;  %v2705_v44 = vld [vmem:[%s3663_s1 + $0xd0] sm:$0xff]   ;;  %v549_v46 = vld [vmem:[%s2959_s30 + $0x300] sm:$0xff]  ;;  %v765_v50 = vpack.c.bf16 %v566_v43, %v565_v41 }
  0x40   : > { %876 = vxpose.xlu1.c.b16.cont [2/8] (narrow) %v726_v59, 16  ;;  %v750_v59 = vpack.c.bf16 %v536_v48, %v535_v47  ;;  %2449 = vmatprep.subr.bf16.mxu0 %v2682_v54  ;;  %v550_v47 = vld [vmem:[%s2959_s30 + $0x308] sm:$0xff]  ;;  %v567_v48 = vld [vmem:[%s2959_s30 + $0x390] sm:$0xff]  ;;  %v568_v51 = vld [vmem:[%s2959_s30 + $0x398] sm:$0xff] }
  0x41   : > { %2465 = vmatprep.subr.bf16.mxu1 %v2697_v23  ;;  %v757_v52 = vpack.c.bf16 %v550_v47, %v549_v46  ;;  %v551_v54 = vld [vmem:[%s2959_s30 + $0x310] sm:$0xff]  ;;  %v552_v55 = vld [vmem:[%s2959_s30 + $0x318] sm:$0xff]  ;;  %v569_v56 = vld [vmem:[%s2959_s30 + $0x3a0] sm:$0xff] }
  0x42   : > { %2466 = vmatpush3.bf16.msra.mxu1 %v2699_v29  ;;  %v570_v57 = vld [vmem:[%s2959_s30 + $0x3a8] sm:$0xff]  ;;  %v2694_v8 = vld [vmem:[%s3663_s1 + $0x130] sm:$0xff]   ;;  %v556_v11 = vld [vmem:[%s2959_s30 + $0x338] sm:$0xff] }
  0x43   : > { %893 = vxpose.xlu0.c.b16.cont [3/8] (narrow) %v735_v0, 16  ;;  %v522_v0 = vld [vmem:[%s2959_s30 + $0x228] sm:$0xff]  ;;  %2450 = vmatpush3.bf16.msra.mxu0 %v2683_v58  ;;  %v766_v58 = vpack.c.bf16 %v568_v51, %v567_v48  ;;  %v573_v13 = vld [vmem:[%s2959_s30 + $0x3c0] sm:$0xff]  ;;  %v576_v23 = vld [vmem:[%s2959_s30 + $0x3d8] sm:$0xff] }
  0x44   : > { %877 = vxpose.xlu1.c.b16.cont [3/8] (narrow) %v727_v1, 16  ;;  %v539_v1 = vld [vmem:[%s2959_s30 + $0x2b0] sm:$0xff]  ;;  %2451 = vmatprep.subr.bf16.mxu0 %v2684_v63  ;;  %v554_v60 = vld [vmem:[%s2959_s30 + $0x328] sm:$0xff]  ;;  %v2690_v63 = vld [vmem:[%s3663_s1 + $0x138] sm:$0xff]  }
  0x45   : > { %v752_v12 = vpack.c.bf16 %v540_v2, %v539_v1  ;;  %2467 = vmatprep.subr.bf16.mxu1 %v2701_v34  ;;  %v2692_v1 = vld [vmem:[%s3663_s1 + $0x170] sm:$0xff]   ;;  %v574_v14 = vld [vmem:[%s2959_s30 + $0x3c8] sm:$0xff]  ;;  %v2704_v29 = vld [vmem:[%s3663_s1 + $0x158] sm:$0xff]  }
  0x46   : > { %2468 = vmatpush3.bf16.msra.mxu1 %v2703_v38  ;;  %v571_v2 = vld [vmem:[%s2959_s30 + $0x3b0] sm:$0xff]  ;;  %v2706_v34 = vld [vmem:[%s3663_s1 + $0x118] sm:$0xff]   ;;  %v597_v46 = vld [vmem:[%s2959_s30 + $0x480] sm:$0xff] }
  0x47   : > { %894 = vxpose.xlu0.c.b16.cont [4/8] (narrow) %v736_v6, 16  ;;  %v2688_v6 = vld [vmem:[%s3663_s1 + $0x178] sm:$0xff]   ;;  %2452 = vmatpush3.bf16.msra.mxu0 %v2685_v3  ;;  %v579_v38 = vld [vmem:[%s2959_s30 + $0x3f0] sm:$0xff]  ;;  %v598_v47 = vld [vmem:[%s2959_s30 + $0x488] sm:$0xff] }
  0x48   : > { %878 = vxpose.xlu1.c.b16.cont [4/8] (narrow) %v728_v7, 16  ;;  %v743_v7 = vpack.c.bf16 %v522_v0, %v521_v62  ;;  %2481 = vmatprep.subr.bf16.mxu0 %v2688_v6  ;;  %v758_v62 = vpack.c.bf16 %v552_v55, %v551_v54  ;;  %v572_v3 = vld [vmem:[%s2959_s30 + $0x3b8] sm:$0xff]  ;;  %v767_v6 = vpack.c.bf16 %v570_v57, %v569_v56  ;;  %v563_v41 = vld [vmem:[%s2959_s30 + $0x370] sm:$0xff] }
  0x49   : > { %2469 = vmatprep.subr.bf16.mxu1 %v2705_v44  ;;  %v2710_v43 = vld [vmem:[%s3663_s1 + $0x110] sm:$0xff]   ;;  %v564_v44 = vld [vmem:[%s2959_s30 + $0x378] sm:$0xff]  ;;  %v781_v56 = vpack.c.bf16 %v598_v47, %v597_v46  ;;  %v2741_v47 = vld [vmem:[%s3663_s1 + $0x1c8] sm:$0xff]  }
  0x4a   : > { %v764_v51 = vpack.c.bf16 %v564_v44, %v563_v41  ;;  %v599_v54 = vld [vmem:[%s2959_s30 + $0x490] sm:$0xff]  ;;  %v600_v55 = vld [vmem:[%s2959_s30 + $0x498] sm:$0xff] }
  0x4b   : > { %895 = vxpose.xlu0.c.b16.cont [5/8] (narrow) %v737_v15, 16  ;;  %v744_v15 = vpack.c.bf16 %v524_v10, %v523_v9  ;;  %v2715_v10 = vld [vmem:[%s3663_s1 + $0x80] sm:$0xff]   ;;  %v583_v57 = vld [vmem:[%s2959_s30 + $0x410] sm:$0xff] }
  0x4c   : > { %879 = vxpose.xlu1.c.b16.cont [5/8] (narrow) %v729_v17, 16  ;;  %v526_v17 = vld [vmem:[%s2959_s30 + $0x248] sm:$0xff]  ;;  %v2739_v46 = vld [vmem:[%s3663_s1 + $0x190] sm:$0xff]  }
  0x4d   : > { %v745_v22 = vpack.c.bf16 %v526_v17, %v525_v16  ;;  %v557_v16 = vld [vmem:[%s2959_s30 + $0x340] sm:$0xff]  ;;  %v558_v17 = vld [vmem:[%s2959_s30 + $0x348] sm:$0xff] }
  0x4f   : > { %896 = vxpose.xlu0.c.b16.cont [6/8] (narrow) %v738_v24, 16  ;;  %v527_v24 = vld [vmem:[%s2959_s30 + $0x250] sm:$0xff] }
  0x50   : > { %880 = vxpose.xlu1.c.b16.cont [6/8] (narrow) %v730_v27, 16  ;;  %v754_v27 = vpack.c.bf16 %v544_v21, %v543_v18  ;;  %v746_v30 = vpack.c.bf16 %v528_v25, %v527_v24  ;;  %v2717_v18 = vld [vmem:[%s3663_s1 + $0x1f8] sm:$0xff]   ;;  %v2700_v21 = vld [vmem:[%s3663_s1 + $0x160] sm:$0xff]   ;;  %v769_v24 = vpack.c.bf16 %v574_v14, %v573_v13  ;;  %v559_v25 = vld [vmem:[%s2959_s30 + $0x350] sm:$0xff] }
  0x51   : > { %v2723_v13 = vld [vmem:[%s3663_s1 + $0x1b0] sm:$0xff]   ;;  %v588_v14 = vld [vmem:[%s2959_s30 + $0x438] sm:$0xff] }
  0x53   : > { %897 = vxpose.xlu0.c.b16.cont [7/8] (narrow) %v739_v32, 16  ;;  %v530_v32 = vld [vmem:[%s2959_s30 + $0x268] sm:$0xff] }
  0x54   : > { %881 = vxpose.xlu1.c.b16.cont [7/8] (narrow) %v731_v35, 16  ;;  %v755_v35 = vpack.c.bf16 %v546_v28, %v545_v26  ;;  %v747_v37 = vpack.c.bf16 %v530_v32, %v529_v31  ;;  %v761_v26 = vpack.c.bf16 %v558_v17, %v557_v16  ;;  %v2702_v28 = vld [vmem:[%s3663_s1 + $0x120] sm:$0xff]   ;;  %v578_v32 = vld [vmem:[%s2959_s30 + $0x3e8] sm:$0xff] }
  0x55   : > { %v577_v31 = vld [vmem:[%s2959_s30 + $0x3e0] sm:$0xff]  ;;  %v606_v17 = vld [vmem:[%s2959_s30 + $0x4c8] sm:$0xff] }
  0x56   : > { %v605_v16 = vld [vmem:[%s2959_s30 + $0x4c0] sm:$0xff] }
  0x57   : > { %898 = vxpose.xlu0.c.b16.end [8/8] (narrow) %v740_v40, 16  ;;  %v532_v40 = vld [vmem:[%s2959_s30 + $0x278] sm:$0xff] }
  0x58   : > { %882 = vxpose.xlu1.c.b16.end [8/8] (narrow) %v732_v42, 16  ;;  %v756_v42 = vpack.c.bf16 %v548_v36, %v547_v33  ;;  %v748_v45 = vpack.c.bf16 %v532_v40, %v531_v39  ;;  %v562_v36 = vld [vmem:[%s2959_s30 + $0x368] sm:$0xff]  ;;  %v580_v39 = vld [vmem:[%s2959_s30 + $0x3f8] sm:$0xff]  ;;  %v771_v40 = vpack.c.bf16 %v578_v32, %v577_v31 }
  0x59   : > { %v772_v48 = vpack.c.bf16 %v580_v39, %v579_v38  ;;  %v2733_v31 = vld [vmem:[%s3663_s1 + $0x1d8] sm:$0xff]   ;;  %v594_v38 = vld [vmem:[%s2959_s30 + $0x468] sm:$0xff]  ;;  %v2737_v39 = vld [vmem:[%s3663_s1 + $0x1d0] sm:$0xff]  }
  0x5b   : > { %923 = vxpose.xlu0.c.b16.start [1/8] (narrow) %v749_v49, 16  ;;  %v2707_v49 = vld [vmem:[%s3663_s1 + $0x90] sm:$0xff]  }
  0x5c   : > { %907 = vxpose.xlu1.c.b16.start [1/8] (narrow) %v741_v53, 16  ;;  %2470 = vmatpush3.bf16.msra.mxu1 %v2707_v49  ;;  %v2709_v53 = vld [vmem:[%s3663_s1 + $0xc8] sm:$0xff]   ;;  %v581_v49 = vld [vmem:[%s2959_s30 + $0x400] sm:$0xff] }
  0x5d   : > { %2471 = vmatprep.subr.bf16.mxu1 %v2709_v53  ;;  %v2716_v53 = vld [vmem:[%s3663_s1 + $0x140] sm:$0xff]  }
  0x5f   : > { %924 = vxpose.xlu0.c.b16.cont [2/8] (narrow) %v750_v59, 16  ;;  %v553_v59 = vld [vmem:[%s2959_s30 + $0x320] sm:$0xff] }
  0x60   : > { %908 = vxpose.xlu1.c.b16.cont [2/8] (narrow) %v742_v61, 16  ;;  %v2711_v61 = vld [vmem:[%s3663_s1 + $0x88] sm:$0xff]   ;;  %v759_v9 = vpack.c.bf16 %v554_v60, %v553_v59  ;;  %v584_v59 = vld [vmem:[%s2959_s30 + $0x418] sm:$0xff]  ;;  %v2718_v60 = vld [vmem:[%s3663_s1 + $0x100] sm:$0xff]  }
  0x61   : > { %2472 = vmatpush3.bf16.msra.mxu1 %v2711_v61  ;;  %v2720_v61 = vld [vmem:[%s3663_s1 + $0x278] sm:$0xff]  }
  0x63   : > { %925 = vxpose.xlu0.c.b16.cont [3/8] (narrow) %v751_v5, 16  ;;  %v2713_v5 = vld [vmem:[%s3663_s1 + $0xc0] sm:$0xff]  }
  0x64   : > { %909 = vxpose.xlu1.c.b16.cont [3/8] (narrow) %v743_v7, 16  ;;  %v555_v7 = vld [vmem:[%s2959_s30 + $0x330] sm:$0xff]  ;;  %2473 = vmatprep.subr.bf16.mxu1 %v2713_v5 }
  0x65   : > { %2474 = vmatpush3.bf16.msra.mxu1 %v2715_v10  ;;  %v760_v19 = vpack.c.bf16 %v556_v11, %v555_v7  ;;  %v603_v7 = vld [vmem:[%s2959_s30 + $0x4b0] sm:$0xff] }
  0x66   : > { %2503 = vmatprep.subr.bf16.mxu1 %v2717_v18  ;;  %v587_v11 = vld [vmem:[%s2959_s30 + $0x430] sm:$0xff] }
  0x67   : > { %926 = vxpose.xlu0.c.b16.cont [4/8] (narrow) %v752_v12, 16  ;;  %v2696_v12 = vld [vmem:[%s3663_s1 + $0x168] sm:$0xff]  }
  0x68   : > { %910 = vxpose.xlu1.c.b16.cont [4/8] (narrow) %v744_v15, 16  ;;  %v768_v15 = vpack.c.bf16 %v572_v3, %v571_v2  ;;  %v2719_v2 = vld [vmem:[%s3663_s1 + $0x1b8] sm:$0xff]   ;;  %v585_v3 = vld [vmem:[%s2959_s30 + $0x420] sm:$0xff] }
  0x6b   : > { %927 = vxpose.xlu0.c.b16.cont [5/8] (narrow) %v753_v20, 16  ;;  %v2698_v20 = vld [vmem:[%s3663_s1 + $0x128] sm:$0xff]  }
  0x6c   : > { %911 = vxpose.xlu1.c.b16.cont [5/8] (narrow) %v745_v22, 16  ;;  %v575_v22 = vld [vmem:[%s2959_s30 + $0x3d0] sm:$0xff] }
  0x6f   : > { %928 = vxpose.xlu0.c.b16.cont [6/8] (narrow) %v754_v27, 16  ;;  %v560_v27 = vld [vmem:[%s2959_s30 + $0x358] sm:$0xff] }
  0x70   : > { %912 = vxpose.xlu1.c.b16.cont [6/8] (narrow) %v746_v30, 16  ;;  %v770_v30 = vpack.c.bf16 %v576_v23, %v575_v22  ;;  %v762_v33 = vpack.c.bf16 %v560_v27, %v559_v25  ;;  %v2727_v22 = vld [vmem:[%s3663_s1 + $0x1a8] sm:$0xff]   ;;  %v2729_v23 = vld [vmem:[%s3663_s1 + $0x1e0] sm:$0xff]   ;;  %v608_v25 = vld [vmem:[%s2959_s30 + $0x4d8] sm:$0xff] }
  0x71   : > { %v591_v27 = vld [vmem:[%s2959_s30 + $0x450] sm:$0xff] }
  0x73   : > { %929 = vxpose.xlu0.c.b16.cont [7/8] (narrow) %v755_v35, 16  ;;  %v561_v35 = vld [vmem:[%s2959_s30 + $0x360] sm:$0xff] }
  0x74   : > { %913 = vxpose.xlu1.c.b16.cont [7/8] (narrow) %v747_v37, 16  ;;  %v2708_v37 = vld [vmem:[%s3663_s1 + $0x150] sm:$0xff]  }
  0x77   : > { %930 = vxpose.xlu0.c.b16.end [8/8] (narrow) %v756_v42, 16  ;;  %v763_v42 = vpack.c.bf16 %v562_v36, %v561_v35  ;;  %v2735_v36 = vld [vmem:[%s3663_s1 + $0x198] sm:$0xff]  }
  0x78   : > { %914 = vxpose.xlu1.c.b16.end [8/8] (narrow) %v748_v45, 16  ;;  %v2712_v45 = vld [vmem:[%s3663_s1 + $0x148] sm:$0xff]  }
  0x7b   : > { %955 = vxpose.xlu0.c.b16.start [1/8] (narrow) %v765_v50, 16  ;;  %v582_v50 = vld [vmem:[%s2959_s30 + $0x408] sm:$0xff] }
  0x7c   : > { %939 = vxpose.xlu1.c.b16.start [1/8] (narrow) %v757_v52, 16  ;;  %v2714_v52 = vld [vmem:[%s3663_s1 + $0x108] sm:$0xff]  }
  0x7d   : > { %v867_v0 = vpop.trf.xlu0 }
  0x7e   : > { %1899 = vmatprep.mubr.bf16.mxu0 %v867_v0  ;;  %v851_v4 = vpop.trf.xlu1  ;;  %v602_v0 = vld [vmem:[%s2959_s30 + $0x4a8] sm:$0xff] }
  0x7f   : > { %956 = vxpose.xlu0.c.b16.cont [2/8] (narrow) %v766_v58, 16  ;;  %1900 = vmatmul.mubr.bf16.vlgmr.msra.gmra.mxu0 %v851_v4  ;;  %v773_v58 = vpack.c.bf16 %v582_v50, %v581_v49  ;;  %v586_v4 = vld [vmem:[%s2959_s30 + $0x428] sm:$0xff] }
  0x80   : > { %940 = vxpose.xlu1.c.b16.cont [2/8] (narrow) %v758_v62, 16  ;;  %2482 = vmatpush3.bf16.msra.mxu0 %v2690_v63  ;;  %v782_v62 = vpack.c.bf16 %v600_v55, %v599_v54  ;;  %v601_v63 = vld [vmem:[%s2959_s30 + $0x4a0] sm:$0xff]  ;;  %v630_v50 = vld [vmem:[%s2959_s30 + $0x588] sm:$0xff] }
  0x81   : > { %2483 = vmatprep.subr.bf16.mxu0 %v2692_v1  ;;  %v774_v1 = vpack.c.bf16 %v584_v59, %v583_v57  ;;  %v783_v10 = vpack.c.bf16 %v602_v0, %v601_v63  ;;  %v614_v54 = vld [vmem:[%s2959_s30 + $0x508] sm:$0xff]  ;;  %v2745_v55 = vld [vmem:[%s3663_s1 + $0x1c0] sm:$0xff]   ;;  %v631_v57 = vld [vmem:[%s2959_s30 + $0x590] sm:$0xff] }
  0x82   : > { %v615_v59 = vld [vmem:[%s2959_s30 + $0x510] sm:$0xff]  ;;  %v2750_v63 = vld [vmem:[%s3663_s1 + $0x2f8] sm:$0xff]   ;;  %v633_v0 = vld [vmem:[%s2959_s30 + $0x5a0] sm:$0xff] }
  0x83   : > { %957 = vxpose.xlu0.c.b16.cont [3/8] (narrow) %v767_v6, 16  ;;  %v2721_v6 = vld [vmem:[%s3663_s1 + $0x1f0] sm:$0xff]  }
  0x84   : > { %941 = vxpose.xlu1.c.b16.cont [3/8] (narrow) %v759_v9, 16  ;;  %2484 = vmatpush3.bf16.msra.mxu0 %v2694_v8  ;;  %v604_v8 = vld [vmem:[%s2959_s30 + $0x4b8] sm:$0xff] }
  0x85   : > { %2485 = vmatprep.subr.bf16.mxu0 %v2696_v12  ;;  %v775_v12 = vpack.c.bf16 %v586_v4, %v585_v3  ;;  %v784_v18 = vpack.c.bf16 %v604_v8, %v603_v7  ;;  %v617_v4 = vld [vmem:[%s2959_s30 + $0x520] sm:$0xff]  ;;  %v2724_v8 = vld [vmem:[%s3663_s1 + $0x270] sm:$0xff]  }
  0x87   : > { %958 = vxpose.xlu0.c.b16.cont [4/8] (narrow) %v768_v15, 16  ;;  %v2725_v15 = vld [vmem:[%s3663_s1 + $0x1e8] sm:$0xff]  }
  0x88   : > { %942 = vxpose.xlu1.c.b16.cont [4/8] (narrow) %v760_v19, 16  ;;  %2486 = vmatpush3.bf16.msra.mxu0 %v2698_v20  ;;  %v589_v19 = vld [vmem:[%s2959_s30 + $0x440] sm:$0xff]  ;;  %v590_v20 = vld [vmem:[%s2959_s30 + $0x448] sm:$0xff] }
  0x89   : > { %2487 = vmatprep.subr.bf16.mxu0 %v2700_v21  ;;  %v776_v21 = vpack.c.bf16 %v588_v14, %v587_v11  ;;  %v635_v11 = vld [vmem:[%s2959_s30 + $0x5b0] sm:$0xff] }
  0x8a   : > { %v2726_v14 = vld [vmem:[%s3663_s1 + $0x230] sm:$0xff]  }
  0x8b   : > { %959 = vxpose.xlu0.c.b16.cont [5/8] (narrow) %v769_v24, 16  ;;  %v607_v24 = vld [vmem:[%s2959_s30 + $0x4d0] sm:$0xff] }
  0x8c   : > { %943 = vxpose.xlu1.c.b16.cont [5/8] (narrow) %v761_v26, 16  ;;  %2488 = vmatpush3.bf16.msra.mxu0 %v2702_v28  ;;  %v785_v26 = vpack.c.bf16 %v606_v17, %v605_v16  ;;  %v777_v28 = vpack.c.bf16 %v590_v20, %v589_v19  ;;  %v786_v32 = vpack.c.bf16 %v608_v25, %v607_v24  ;;  %v620_v16 = vld [vmem:[%s2959_s30 + $0x538] sm:$0xff]  ;;  %v2728_v17 = vld [vmem:[%s3663_s1 + $0x268] sm:$0xff]   ;;  %v2732_v25 = vld [vmem:[%s3663_s1 + $0x260] sm:$0xff]  }
  0x8d   : > { %2489 = vmatprep.subr.bf16.mxu0 %v2704_v29  ;;  %v592_v29 = vld [vmem:[%s2959_s30 + $0x458] sm:$0xff]  ;;  %v638_v20 = vld [vmem:[%s2959_s30 + $0x5c8] sm:$0xff] }
  0x8e   : > { %v778_v35 = vpack.c.bf16 %v592_v29, %v591_v27  ;;  %v2730_v24 = vld [vmem:[%s3663_s1 + $0x228] sm:$0xff]   ;;  %v640_v27 = vld [vmem:[%s2959_s30 + $0x5d8] sm:$0xff]  ;;  %v623_v29 = vld [vmem:[%s2959_s30 + $0x550] sm:$0xff] }
  0x8f   : > { %960 = vxpose.xlu0.c.b16.cont [6/8] (narrow) %v770_v30, 16  ;;  %v2731_v30 = vld [vmem:[%s3663_s1 + $0x1a0] sm:$0xff]  }
  0x90   : > { %944 = vxpose.xlu1.c.b16.cont [6/8] (narrow) %v762_v33, 16  ;;  %2490 = vmatpush3.bf16.msra.mxu0 %v2706_v34  ;;  %v609_v33 = vld [vmem:[%s2959_s30 + $0x4e0] sm:$0xff]  ;;  %v610_v34 = vld [vmem:[%s2959_s30 + $0x4e8] sm:$0xff] }
  0x91   : > { %2491 = vmatprep.subr.bf16.mxu0 %v2708_v37  ;;  %v593_v37 = vld [vmem:[%s2959_s30 + $0x460] sm:$0xff]  ;;  %v787_v41 = vpack.c.bf16 %v610_v34, %v609_v33  ;;  %v2736_v33 = vld [vmem:[%s3663_s1 + $0x258] sm:$0xff]  }
  0x92   : > { %v779_v44 = vpack.c.bf16 %v594_v38, %v593_v37  ;;  %v641_v34 = vld [vmem:[%s2959_s30 + $0x5e0] sm:$0xff]  ;;  %v626_v38 = vld [vmem:[%s2959_s30 + $0x568] sm:$0xff] }
  0x93   : > { %961 = vxpose.xlu0.c.b16.cont [7/8] (narrow) %v771_v40, 16  ;;  %v611_v40 = vld [vmem:[%s2959_s30 + $0x4f0] sm:$0xff]  ;;  %v625_v37 = vld [vmem:[%s2959_s30 + $0x560] sm:$0xff] }
  0x94   : > { %945 = vxpose.xlu1.c.b16.cont [7/8] (narrow) %v763_v42, 16  ;;  %2492 = vmatpush3.bf16.msra.mxu0 %v2710_v43  ;;  %v612_v42 = vld [vmem:[%s2959_s30 + $0x4f8] sm:$0xff]  ;;  %v595_v43 = vld [vmem:[%s2959_s30 + $0x470] sm:$0xff] }
  0x95   : > { %2493 = vmatprep.subr.bf16.mxu0 %v2712_v45  ;;  %v596_v45 = vld [vmem:[%s2959_s30 + $0x478] sm:$0xff]  ;;  %v788_v49 = vpack.c.bf16 %v612_v42, %v611_v40  ;;  %v643_v42 = vld [vmem:[%s2959_s30 + $0x5f0] sm:$0xff] }
  0x96   : > { %v2738_v40 = vld [vmem:[%s3663_s1 + $0x218] sm:$0xff]  }
  0x97   : > { %962 = vxpose.xlu0.c.b16.end [8/8] (narrow) %v772_v48, 16  ;;  %v629_v48 = vld [vmem:[%s2959_s30 + $0x580] sm:$0xff] }
  0x98   : > { %946 = vxpose.xlu1.c.b16.end [8/8] (narrow) %v764_v51, 16  ;;  %2494 = vmatpush3.bf16.msra.mxu0 %v2714_v52  ;;  %v780_v51 = vpack.c.bf16 %v596_v45, %v595_v43  ;;  %v613_v52 = vld [vmem:[%s2959_s30 + $0x500] sm:$0xff]  ;;  %v644_v43 = vld [vmem:[%s2959_s30 + $0x5f8] sm:$0xff]  ;;  %v627_v45 = vld [vmem:[%s2959_s30 + $0x570] sm:$0xff] }
  0x99   : > { %2495 = vmatprep.subr.bf16.mxu0 %v2716_v53  ;;  %v2743_v53 = vld [vmem:[%s3663_s1 + $0x188] sm:$0xff]  }
  0x9b   : > { %987 = vxpose.xlu0.c.b16.start [1/8] (narrow) %v781_v56, 16  ;;  %v797_v56 = vpack.c.bf16 %v630_v50, %v629_v48  ;;  %v2742_v48 = vld [vmem:[%s3663_s1 + $0x210] sm:$0xff]   ;;  %v661_v50 = vld [vmem:[%s2959_s30 + $0x680] sm:$0xff] }
  0x9c   : > { %971 = vxpose.xlu1.c.b16.start [1/8] (narrow) %v773_v58, 16  ;;  %2496 = vmatpush3.bf16.msra.mxu0 %v2718_v60  ;;  %v632_v58 = vld [vmem:[%s2959_s30 + $0x598] sm:$0xff]  ;;  %v789_v60 = vpack.c.bf16 %v614_v54, %v613_v52  ;;  %v804_v52 = vpack.c.bf16 %v644_v43, %v643_v42  ;;  %v646_v54 = vld [vmem:[%s2959_s30 + $0x608] sm:$0xff]  ;;  %v2760_v43 = vld [vmem:[%s3663_s1 + $0x2d0] sm:$0xff]  }
  0x9d   : > { %v899_v5 = vpop.trf.xlu0  ;;  %2525 = vmatprep.subr.bf16.mxu0 %v2720_v61  ;;  %v2747_v61 = vld [vmem:[%s3663_s1 + $0x180] sm:$0xff]   ;;  %v658_v42 = vld [vmem:[%s2959_s30 + $0x668] sm:$0xff] }
  0x9e   : > { %v883_v9 = vpop.trf.xlu1  ;;  %1940 = vmatprep.mubr.bf16.mxu1 %v899_v5  ;;  %v618_v5 = vld [vmem:[%s2959_s30 + $0x528] sm:$0xff] }
  0x9f   : > { %988 = vxpose.xlu0.c.b16.cont [2/8] (narrow) %v782_v62, 16  ;;  %1941 = vmatmul.mubr.bf16.vlgmr.msra.gmra.mxu1 %v883_v9  ;;  %v616_v62 = vld [vmem:[%s2959_s30 + $0x518] sm:$0xff] }
  0xa0   : > { %972 = vxpose.xlu1.c.b16.cont [2/8] (narrow) %v774_v1, 16  ;;  %2504 = vmatpush3.bf16.msra.mxu1 %v2719_v2  ;;  %v798_v1 = vpack.c.bf16 %v632_v58, %v631_v57  ;;  %v634_v2 = vld [vmem:[%s2959_s30 + $0x5a8] sm:$0xff]  ;;  %v790_v3 = vpack.c.bf16 %v616_v62, %v615_v59  ;;  %v2748_v57 = vld [vmem:[%s3663_s1 + $0x240] sm:$0xff]   ;;  %v663_v58 = vld [vmem:[%s2959_s30 + $0x690] sm:$0xff] }
  0xa1   : > { %2505 = vmatprep.subr.bf16.mxu1 %v2721_v6  ;;  %v2722_v6 = vld [vmem:[%s3663_s1 + $0x238] sm:$0xff]  }
  0xa2   : > { %v664_v59 = vld [vmem:[%s2959_s30 + $0x698] sm:$0xff] }
  0xa3   : > { %989 = vxpose.xlu0.c.b16.cont [3/8] (narrow) %v783_v10, 16  ;;  %v799_v10 = vpack.c.bf16 %v634_v2, %v633_v0  ;;  %v648_v62 = vld [vmem:[%s2959_s30 + $0x618] sm:$0xff]  ;;  %v2749_v0 = vld [vmem:[%s3663_s1 + $0x200] sm:$0xff]  }
  0xa4   : > { %973 = vxpose.xlu1.c.b16.cont [3/8] (narrow) %v775_v12, 16  ;;  %2506 = vmatpush3.bf16.msra.mxu1 %v2723_v13  ;;  %v636_v12 = vld [vmem:[%s2959_s30 + $0x5b8] sm:$0xff]  ;;  %v791_v13 = vpack.c.bf16 %v618_v5, %v617_v4  ;;  %v665_v2 = vld [vmem:[%s2959_s30 + $0x6a0] sm:$0xff]  ;;  %v814_v4 = vpack.c.bf16 %v664_v59, %v663_v58  ;;  %v678_v58 = vld [vmem:[%s2959_s30 + $0x708] sm:$0xff] }
  0xa5   : > { %2507 = vmatprep.subr.bf16.mxu1 %v2725_v15  ;;  %v619_v15 = vld [vmem:[%s2959_s30 + $0x530] sm:$0xff]  ;;  %v800_v19 = vpack.c.bf16 %v636_v12, %v635_v11  ;;  %v649_v5 = vld [vmem:[%s2959_s30 + $0x620] sm:$0xff]  ;;  %v668_v12 = vld [vmem:[%s2959_s30 + $0x6b8] sm:$0xff] }
  0xa6   : > { %v667_v11 = vld [vmem:[%s2959_s30 + $0x6b0] sm:$0xff]  ;;  %v2764_v59 = vld [vmem:[%s3663_s1 + $0x2c0] sm:$0xff]  }
  0xa7   : > { %990 = vxpose.xlu0.c.b16.cont [4/8] (narrow) %v784_v18, 16  ;;  %v637_v18 = vld [vmem:[%s2959_s30 + $0x5c0] sm:$0xff] }
  0xa8   : > { %974 = vxpose.xlu1.c.b16.cont [4/8] (narrow) %v776_v21, 16  ;;  %2508 = vmatpush3.bf16.msra.mxu1 %v2727_v22  ;;  %v621_v21 = vld [vmem:[%s2959_s30 + $0x540] sm:$0xff]  ;;  %v792_v22 = vpack.c.bf16 %v620_v16, %v619_v15  ;;  %v651_v15 = vld [vmem:[%s2959_s30 + $0x630] sm:$0xff]  ;;  %v652_v16 = vld [vmem:[%s2959_s30 + $0x638] sm:$0xff] }
  0xa9   : > { %2509 = vmatprep.subr.bf16.mxu1 %v2729_v23  ;;  %v622_v23 = vld [vmem:[%s2959_s30 + $0x548] sm:$0xff] }
  0xab   : > { %991 = vxpose.xlu0.c.b16.cont [5/8] (narrow) %v785_v26, 16  ;;  %v639_v26 = vld [vmem:[%s2959_s30 + $0x5d0] sm:$0xff] }
  0xac   : > { %975 = vxpose.xlu1.c.b16.cont [5/8] (narrow) %v777_v28, 16  ;;  %2510 = vmatpush3.bf16.msra.mxu1 %v2731_v30  ;;  %v801_v28 = vpack.c.bf16 %v638_v20, %v637_v18  ;;  %v624_v30 = vld [vmem:[%s2959_s30 + $0x558] sm:$0xff]  ;;  %v2753_v18 = vld [vmem:[%s3663_s1 + $0x2b0] sm:$0xff]   ;;  %v669_v20 = vld [vmem:[%s2959_s30 + $0x6c0] sm:$0xff] }
  0xad   : > { %2511 = vmatprep.subr.bf16.mxu1 %v2733_v31  ;;  %v793_v31 = vpack.c.bf16 %v622_v23, %v621_v21  ;;  %v670_v21 = vld [vmem:[%s2959_s30 + $0x6c8] sm:$0xff]  ;;  %v653_v23 = vld [vmem:[%s2959_s30 + $0x640] sm:$0xff] }
  0xaf   : > { %992 = vxpose.xlu0.c.b16.cont [6/8] (narrow) %v786_v32, 16  ;;  %v2734_v32 = vld [vmem:[%s3663_s1 + $0x220] sm:$0xff]  }
  0xb0   : > { %976 = vxpose.xlu1.c.b16.cont [6/8] (narrow) %v778_v35, 16  ;;  %2512 = vmatpush3.bf16.msra.mxu1 %v2735_v36  ;;  %v642_v35 = vld [vmem:[%s2959_s30 + $0x5e8] sm:$0xff]  ;;  %v802_v36 = vpack.c.bf16 %v640_v27, %v639_v26  ;;  %v2756_v27 = vld [vmem:[%s3663_s1 + $0x2e0] sm:$0xff]  }
  0xb1   : > { %2513 = vmatprep.subr.bf16.mxu1 %v2737_v39  ;;  %v794_v39 = vpack.c.bf16 %v624_v30, %v623_v29  ;;  %v2755_v26 = vld [vmem:[%s3663_s1 + $0x2a8] sm:$0xff]   ;;  %v671_v30 = vld [vmem:[%s2959_s30 + $0x6d0] sm:$0xff] }
  0xb3   : > { %993 = vxpose.xlu0.c.b16.cont [7/8] (narrow) %v787_v41, 16  ;;  %v2740_v41 = vld [vmem:[%s3663_s1 + $0x250] sm:$0xff]  }
  0xb4   : > { %977 = vxpose.xlu1.c.b16.cont [7/8] (narrow) %v779_v44, 16  ;;  %2514 = vmatpush3.bf16.msra.mxu1 %v2739_v46  ;;  %v803_v44 = vpack.c.bf16 %v642_v35, %v641_v34  ;;  %v628_v46 = vld [vmem:[%s2959_s30 + $0x578] sm:$0xff] }
  0xb5   : > { %2515 = vmatprep.subr.bf16.mxu1 %v2741_v47  ;;  %v795_v47 = vpack.c.bf16 %v626_v38, %v625_v37  ;;  %v656_v34 = vld [vmem:[%s2959_s30 + $0x658] sm:$0xff]  ;;  %v673_v38 = vld [vmem:[%s2959_s30 + $0x6e0] sm:$0xff] }
  0xb6   : > { %v2758_v35 = vld [vmem:[%s3663_s1 + $0x2d8] sm:$0xff]  }
  0xb7   : > { %994 = vxpose.xlu0.c.b16.end [8/8] (narrow) %v788_v49, 16  ;;  %v2744_v49 = vld [vmem:[%s3663_s1 + $0x248] sm:$0xff]  }
  0xb8   : > { %978 = vxpose.xlu1.c.b16.end [8/8] (narrow) %v780_v51, 16  ;;  %2516 = vmatpush3.bf16.msra.mxu1 %v2743_v53  ;;  %v662_v51 = vld [vmem:[%s2959_s30 + $0x688] sm:$0xff]  ;;  %v645_v53 = vld [vmem:[%s2959_s30 + $0x600] sm:$0xff] }
  0xb9   : > { %2517 = vmatprep.subr.bf16.mxu1 %v2745_v55  ;;  %v796_v55 = vpack.c.bf16 %v628_v46, %v627_v45  ;;  %v675_v46 = vld [vmem:[%s2959_s30 + $0x6f0] sm:$0xff] }
  0xbb   : > { %1019 = vxpose.xlu0.c.b16.start [1/8] (narrow) %v797_v56, 16  ;;  %v2746_v56 = vld [vmem:[%s3663_s1 + $0x208] sm:$0xff]  }
  0xbc   : > { %1003 = vxpose.xlu1.c.b16.start [1/8] (narrow) %v789_v60, 16  ;;  %2518 = vmatpush3.bf16.msra.mxu1 %v2747_v61  ;;  %v813_v60 = vpack.c.bf16 %v662_v51, %v661_v50  ;;  %v647_v61 = vld [vmem:[%s2959_s30 + $0x610] sm:$0xff]  ;;  %v660_v50 = vld [vmem:[%s2959_s30 + $0x678] sm:$0xff]  ;;  %v2762_v51 = vld [vmem:[%s3663_s1 + $0x2c8] sm:$0xff]  }
  0xbd   : > { %v931_v7 = vpop.trf.xlu0  ;;  %2547 = vmatprep.subr.bf16.mxu1 %v2750_v63  ;;  %v805_v63 = vpack.c.bf16 %v646_v54, %v645_v53  ;;  %v693_v54 = vld [vmem:[%s2959_s30 + $0x780] sm:$0xff] }
  0xbe   : > { %1981 = vmatprep.mubr.bf16.mxu0 %v931_v7  ;;  %v915_v9 = vpop.trf.xlu1  ;;  %v806_v7 = vpack.c.bf16 %v648_v62, %v647_v61  ;;  %v695_v62 = vld [vmem:[%s2959_s30 + $0x790] sm:$0xff] }
  0xbf   : > { %1020 = vxpose.xlu0.c.b16.cont [2/8] (narrow) %v798_v1, 16  ;;  %1982 = vmatmul.mubr.bf16.vlgmr.msra.gmra.mxu0 %v915_v9  ;;  %v2766_v1 = vld [vmem:[%s3663_s1 + $0x378] sm:$0xff]  }
  0xc0   : > { %1004 = vxpose.xlu1.c.b16.cont [2/8] (narrow) %v790_v3, 16  ;;  %2526 = vmatpush3.bf16.msra.mxu0 %v2722_v6  ;;  %v666_v3 = vld [vmem:[%s2959_s30 + $0x6a8] sm:$0xff] }
  0xc1   : > { %2527 = vmatprep.subr.bf16.mxu0 %v2724_v8  ;;  %v650_v6 = vld [vmem:[%s2959_s30 + $0x628] sm:$0xff]  ;;  %v2751_v8 = vld [vmem:[%s3663_s1 + $0x2b8] sm:$0xff]  }
  0xc3   : > { %1021 = vxpose.xlu0.c.b16.cont [3/8] (narrow) %v799_v10, 16  ;;  %v2752_v10 = vld [vmem:[%s3663_s1 + $0x2f0] sm:$0xff]  }
  0xc4   : > { %1005 = vxpose.xlu1.c.b16.cont [3/8] (narrow) %v791_v13, 16  ;;  %2528 = vmatpush3.bf16.msra.mxu0 %v2726_v14  ;;  %v815_v14 = vpack.c.bf16 %v666_v3, %v665_v2  ;;  %v680_v2 = vld [vmem:[%s2959_s30 + $0x718] sm:$0xff] }
  0xc5   : > { %2529 = vmatprep.subr.bf16.mxu0 %v2728_v17  ;;  %v807_v17 = vpack.c.bf16 %v650_v6, %v649_v5  ;;  %v2782_v3 = vld [vmem:[%s3663_s1 + $0x3f8] sm:$0xff]   ;;  %v697_v6 = vld [vmem:[%s2959_s30 + $0x7a0] sm:$0xff] }
  0xc7   : > { %1022 = vxpose.xlu0.c.b16.cont [4/8] (narrow) %v800_v19, 16  ;;  %v2754_v19 = vld [vmem:[%s3663_s1 + $0x2e8] sm:$0xff]  }
  0xc8   : > { %1006 = vxpose.xlu1.c.b16.cont [4/8] (narrow) %v792_v22, 16  ;;  %2530 = vmatpush3.bf16.msra.mxu0 %v2730_v24  ;;  %v816_v22 = vpack.c.bf16 %v668_v12, %v667_v11  ;;  %v654_v24 = vld [vmem:[%s2959_s30 + $0x648] sm:$0xff]  ;;  %v2768_v12 = vld [vmem:[%s3663_s1 + $0x370] sm:$0xff]  }
  0xc9   : > { %2531 = vmatprep.subr.bf16.mxu0 %v2732_v25  ;;  %v808_v25 = vpack.c.bf16 %v652_v16, %v651_v15  ;;  %v809_v29 = vpack.c.bf16 %v654_v24, %v653_v23  ;;  %v682_v11 = vld [vmem:[%s2959_s30 + $0x728] sm:$0xff]  ;;  %v699_v16 = vld [vmem:[%s2959_s30 + $0x7b0] sm:$0xff]  ;;  %v701_v24 = vld [vmem:[%s2959_s30 + $0x7c0] sm:$0xff] }
  0xcb   : > { %1023 = vxpose.xlu0.c.b16.cont [5/8] (narrow) %v801_v28, 16  ;;  %v817_v28 = vpack.c.bf16 %v670_v21, %v669_v20  ;;  %v684_v20 = vld [vmem:[%s2959_s30 + $0x738] sm:$0xff]  ;;  %v2770_v21 = vld [vmem:[%s3663_s1 + $0x368] sm:$0xff]  }
  0xcc   : > { %1007 = vxpose.xlu1.c.b16.cont [5/8] (narrow) %v793_v31, 16  ;;  %2532 = vmatpush3.bf16.msra.mxu0 %v2734_v32  ;;  %v672_v31 = vld [vmem:[%s2959_s30 + $0x6d8] sm:$0xff]  ;;  %v2757_v32 = vld [vmem:[%s3663_s1 + $0x2a0] sm:$0xff]  }
  0xcd   : > { %2533 = vmatprep.subr.bf16.mxu0 %v2736_v33  ;;  %v655_v33 = vld [vmem:[%s2959_s30 + $0x650] sm:$0xff] }
  0xce   : > { %v810_v37 = vpack.c.bf16 %v656_v34, %v655_v33  ;;  %v704_v33 = vld [vmem:[%s2959_s30 + $0x7d8] sm:$0xff]  ;;  %v2773_v34 = vld [vmem:[%s3663_s1 + $0x320] sm:$0xff]  }
  0xcf   : > { %1024 = vxpose.xlu0.c.b16.cont [6/8] (narrow) %v802_v36, 16  ;;  %v818_v36 = vpack.c.bf16 %v672_v31, %v671_v30 }
  0xd0   : > { %1008 = vxpose.xlu1.c.b16.cont [6/8] (narrow) %v794_v39, 16  ;;  %2534 = vmatpush3.bf16.msra.mxu0 %v2738_v40  ;;  %v674_v39 = vld [vmem:[%s2959_s30 + $0x6e8] sm:$0xff]  ;;  %v2759_v40 = vld [vmem:[%s3663_s1 + $0x298] sm:$0xff]  }
  0xd1   : > { %2535 = vmatprep.subr.bf16.mxu0 %v2740_v41  ;;  %v657_v41 = vld [vmem:[%s2959_s30 + $0x660] sm:$0xff] }
  0xd2   : > { %v811_v45 = vpack.c.bf16 %v658_v42, %v657_v41  ;;  %v706_v41 = vld [vmem:[%s2959_s30 + $0x7e8] sm:$0xff]  ;;  %v2775_v42 = vld [vmem:[%s3663_s1 + $0x318] sm:$0xff]  }
  0xd3   : > { %1025 = vxpose.xlu0.c.b16.cont [7/8] (narrow) %v803_v44, 16  ;;  %v819_v44 = vpack.c.bf16 %v674_v39, %v673_v38 }
  0xd4   : > { %1009 = vxpose.xlu1.c.b16.cont [7/8] (narrow) %v795_v47, 16  ;;  %2536 = vmatpush3.bf16.msra.mxu0 %v2742_v48  ;;  %v676_v47 = vld [vmem:[%s2959_s30 + $0x6f8] sm:$0xff]  ;;  %v2761_v48 = vld [vmem:[%s3663_s1 + $0x290] sm:$0xff]  }
  0xd5   : > { %2537 = vmatprep.subr.bf16.mxu0 %v2744_v49  ;;  %v659_v49 = vld [vmem:[%s2959_s30 + $0x670] sm:$0xff] }
  0xd6   : > { %v812_v53 = vpack.c.bf16 %v660_v50, %v659_v49  ;;  %v708_v49 = vld [vmem:[%s2959_s30 + $0x7f8] sm:$0xff]  ;;  %v2777_v50 = vld [vmem:[%s3663_s1 + $0x310] sm:$0xff]  }
  0xd7   : > { %1026 = vxpose.xlu0.c.b16.end [8/8] (narrow) %v804_v52, 16  ;;  %v820_v52 = vpack.c.bf16 %v676_v47, %v675_v46 }
  0xd8   : > { %1010 = vxpose.xlu1.c.b16.end [8/8] (narrow) %v796_v55, 16  ;;  %2538 = vmatpush3.bf16.msra.mxu0 %v2746_v56  ;;  %v694_v55 = vld [vmem:[%s2959_s30 + $0x788] sm:$0xff] }
  0xd9   : > { %2539 = vmatprep.subr.bf16.mxu0 %v2748_v57  ;;  %v2763_v56 = vld [vmem:[%s3663_s1 + $0x288] sm:$0xff]   ;;  %v677_v57 = vld [vmem:[%s2959_s30 + $0x700] sm:$0xff] }
  0xda   : > { %v821_v61 = vpack.c.bf16 %v678_v58, %v677_v57  ;;  %v2780_v57 = vld [vmem:[%s3663_s1 + $0x340] sm:$0xff]  }
  0xdb   : > { %1051 = vxpose.xlu0.c.b16.start [1/8] (narrow) %v813_v60, 16  ;;  %v829_v60 = vpack.c.bf16 %v694_v55, %v693_v54  ;;  %v2781_v58 = vld [vmem:[%s3663_s1 + $0x300] sm:$0xff]  }
  0xdc   : > { %1035 = vxpose.xlu1.c.b16.start [1/8] (narrow) %v805_v63, 16  ;;  %2540 = vmatpush3.bf16.msra.mxu0 %v2749_v0  ;;  %v696_v63 = vld [vmem:[%s2959_s30 + $0x798] sm:$0xff]  ;;  %v2765_v0 = vld [vmem:[%s3663_s1 + $0x280] sm:$0xff]  }
  0xdd   : > { %v963_v9 = vpop.trf.xlu0  ;;  %2569 = vmatprep.subr.bf16.mxu0 %v2766_v1  ;;  %v679_v1 = vld [vmem:[%s2959_s30 + $0x710] sm:$0xff] }
  0xde   : > { %v947_v13 = vpop.trf.xlu1  ;;  %2022 = vmatprep.mubr.bf16.mxu1 %v963_v9  ;;  %v822_v5 = vpack.c.bf16 %v680_v2, %v679_v1  ;;  %v2787_v1 = vld [vmem:[%s3663_s1 + $0x3a8] sm:$0xff]   ;;  %v2788_v2 = vld [vmem:[%s3663_s1 + $0x3e0] sm:$0xff]  }
  0xdf   : > { %1052 = vxpose.xlu0.c.b16.cont [2/8] (narrow) %v814_v4, 16  ;;  %2023 = vmatmul.mubr.bf16.vlgmr.msra.gmra.mxu1 %v947_v13  ;;  %v830_v4 = vpack.c.bf16 %v696_v63, %v695_v62  ;;  %v2785_v63 = vld [vmem:[%s3663_s1 + $0x3b0] sm:$0xff]  }
  0xe0   : > { %1036 = vxpose.xlu1.c.b16.cont [2/8] (narrow) %v806_v7, 16  ;;  %2548 = vmatpush3.bf16.msra.mxu1 %v2751_v8  ;;  %v698_v7 = vld [vmem:[%s2959_s30 + $0x7a8] sm:$0xff]  ;;  %v2767_v8 = vld [vmem:[%s3663_s1 + $0x338] sm:$0xff]  }
  0xe1   : > { %2549 = vmatprep.subr.bf16.mxu1 %v2752_v10  ;;  %v681_v10 = vld [vmem:[%s2959_s30 + $0x720] sm:$0xff] }
  0xe2   : > { %v823_v15 = vpack.c.bf16 %v682_v11, %v681_v10  ;;  %v2796_v10 = vld [vmem:[%s3663_s1 + $0x3c0] sm:$0xff]  }
  0xe3   : > { %1053 = vxpose.xlu0.c.b16.cont [3/8] (narrow) %v815_v14, 16  ;;  %v831_v14 = vpack.c.bf16 %v698_v7, %v697_v6  ;;  %v2792_v6 = vld [vmem:[%s3663_s1 + $0x3d0] sm:$0xff]   ;;  %v2797_v11 = vld [vmem:[%s3663_s1 + $0x380] sm:$0xff]  }
  0xe4   : > { %1037 = vxpose.xlu1.c.b16.cont [3/8] (narrow) %v807_v17, 16  ;;  %2550 = vmatpush3.bf16.msra.mxu1 %v2753_v18  ;;  %v700_v17 = vld [vmem:[%s2959_s30 + $0x7b8] sm:$0xff]  ;;  %v2769_v18 = vld [vmem:[%s3663_s1 + $0x330] sm:$0xff]  }
  0xe5   : > { %2551 = vmatprep.subr.bf16.mxu1 %v2754_v19  ;;  %v683_v19 = vld [vmem:[%s2959_s30 + $0x730] sm:$0xff] }
  0xe6   : > { %v824_v23 = vpack.c.bf16 %v684_v20, %v683_v19  ;;  %v2793_v7 = vld [vmem:[%s3663_s1 + $0x390] sm:$0xff]  }
  0xe7   : > { %1054 = vxpose.xlu0.c.b16.cont [4/8] (narrow) %v816_v22, 16  ;;  %v832_v22 = vpack.c.bf16 %v700_v17, %v699_v16 }
  0xe8   : > { %1038 = vxpose.xlu1.c.b16.cont [4/8] (narrow) %v808_v25, 16  ;;  %2552 = vmatpush3.bf16.msra.mxu1 %v2755_v26  ;;  %v702_v25 = vld [vmem:[%s2959_s30 + $0x7c8] sm:$0xff] }
  0xe9   : > { %2553 = vmatprep.subr.bf16.mxu1 %v2756_v27  ;;  %v2771_v26 = vld [vmem:[%s3663_s1 + $0x328] sm:$0xff]   ;;  %v685_v27 = vld [vmem:[%s2959_s30 + $0x740] sm:$0xff]  ;;  %v833_v30 = vpack.c.bf16 %v702_v25, %v701_v24 }
  0xeb   : > { %1055 = vxpose.xlu0.c.b16.cont [5/8] (narrow) %v817_v28, 16  ;;  %v686_v28 = vld [vmem:[%s2959_s30 + $0x748] sm:$0xff] }
  0xec   : > { %1039 = vxpose.xlu1.c.b16.cont [5/8] (narrow) %v809_v29, 16  ;;  %2554 = vmatpush3.bf16.msra.mxu1 %v2757_v32  ;;  %v2772_v29 = vld [vmem:[%s3663_s1 + $0x360] sm:$0xff]   ;;  %v825_v31 = vpack.c.bf16 %v686_v28, %v685_v27  ;;  %v703_v32 = vld [vmem:[%s2959_s30 + $0x7d0] sm:$0xff] }
  0xed   : > { %2555 = vmatprep.subr.bf16.mxu1 %v2758_v35  ;;  %v687_v35 = vld [vmem:[%s2959_s30 + $0x750] sm:$0xff]  ;;  %v834_v38 = vpack.c.bf16 %v704_v33, %v703_v32  ;;  %v2301_v33 = vld [vmem:[%s3664_s2] ss:$0 sm:$0xff] }
  0xef   : > { %1056 = vxpose.xlu0.c.b16.cont [6/8] (narrow) %v818_v36, 16  ;;  %v688_v36 = vld [vmem:[%s2959_s30 + $0x758] sm:$0xff] }
  0xf0   : > { %1040 = vxpose.xlu1.c.b16.cont [6/8] (narrow) %v810_v37, 16  ;;  %2556 = vmatpush3.bf16.msra.mxu1 %v2759_v40  ;;  %v2774_v37 = vld [vmem:[%s3663_s1 + $0x358] sm:$0xff]   ;;  %v826_v39 = vpack.c.bf16 %v688_v36, %v687_v35  ;;  %v705_v40 = vld [vmem:[%s2959_s30 + $0x7e0] sm:$0xff] }
  0xf1   : > { %2557 = vmatprep.subr.bf16.mxu1 %v2760_v43  ;;  %v689_v43 = vld [vmem:[%s2959_s30 + $0x760] sm:$0xff]  ;;  %v835_v46 = vpack.c.bf16 %v706_v41, %v705_v40 }
  0xf3   : > { %1057 = vxpose.xlu0.c.b16.cont [7/8] (narrow) %v819_v44, 16  ;;  %v690_v44 = vld [vmem:[%s2959_s30 + $0x768] sm:$0xff] }
  0xf4   : > { %1041 = vxpose.xlu1.c.b16.cont [7/8] (narrow) %v811_v45, 16  ;;  %2558 = vmatpush3.bf16.msra.mxu1 %v2761_v48  ;;  %v2776_v45 = vld [vmem:[%s3663_s1 + $0x350] sm:$0xff]   ;;  %v827_v47 = vpack.c.bf16 %v690_v44, %v689_v43 }
  0xf5   : > { %2559 = vmatprep.subr.bf16.mxu1 %v2762_v51  ;;  %v707_v48 = vld [vmem:[%s2959_s30 + $0x7f0] sm:$0xff] }
  0xf6   : > { %v691_v51 = vld [vmem:[%s2959_s30 + $0x770] sm:$0xff]  ;;  %v836_v54 = vpack.c.bf16 %v708_v49, %v707_v48 }
  0xf7   : > { %1058 = vxpose.xlu0.c.b16.end [8/8] (narrow) %v820_v52, 16  ;;  %v692_v52 = vld [vmem:[%s2959_s30 + $0x778] sm:$0xff]  ;;  %s183_s30 = sand.u32 1, %s2858_s13  }
  0xf8   : > { %1042 = vxpose.xlu1.c.b16.end [8/8] (narrow) %v812_v53, 16  ;;  %2560 = vmatpush3.bf16.msra.mxu1 %v2763_v56  ;;  %v2778_v53 = vld [vmem:[%s3663_s1 + $0x348] sm:$0xff]   ;;  %v828_v55 = vpack.c.bf16 %v692_v52, %v691_v51  ;;  %s2298_s4 = sshll.u32 %s183_s30, 4  ;;  %s3617_s11 = scalar_lea.sflag [#allocation3], %s183_s30 }
  0xf9   : > { %2561 = vmatprep.subr.bf16.mxu1 %v2764_v59  ;;  %v2779_v56 = vld [vmem:[%s3663_s1 + $0x308] sm:$0xff]   ;;  %v2783_v59 = vld [vmem:[%s3663_s1 + $0x3b8] sm:$0xff]   ;;  %s185_s5 = scalar_lea.vmem [#allocation2], %s2298_s4 }
  0xfa   : > { %s2214_s6 = sshll.u32 %s185_s5, 4  ;;  %s3613_s6 = int_to_ptr.vmem [resolvable:$true] %s2214_s6 }
  0xfb   : > { %1083 = vxpose.xlu0.c.b16.start [1/8] (narrow) %v829_v60, 16  ;;  %s2798_s15 = scalar_lea.vmem %s3613_s6, 256  ;;  %p2805_p1 = scmp.lt.s32.totalorder %s3613_s6, %s2803_s19 }
  0xfc   : > { %1067 = vxpose.xlu1.c.b16.start [1/8] (narrow) %v821_v61, 16  ;;  %2562 = vmatpush3.bf16.msra.mxu1 %v2765_v0  ;;  %v2784_v61 = vld [vmem:[%s3663_s1 + $0x3f0] sm:$0xff]   ;;  %v2786_v0 = vld [vmem:[%s3663_s1 + $0x3e8] sm:$0xff]   ;;  %p2799_p12 = scmp.ne.s32.totalorder %s3613_s6, %s2798_s15  ;;  %p2806_p2 = scmp.lt.s32.totalorder %s2804_s21, %s2798_s15 }
  0xfd   : > { %v995_v9 = vpop.trf.xlu0  ;;  %2591 = vmatprep.subr.bf16.mxu1 %v2782_v3  ;;  %v2789_v3 = vld [vmem:[%s3663_s1 + $0x3a0] sm:$0xff]  }
  0xfe   : > { %2063 = vmatprep.mubr.bf16.mxu0 %v995_v9  ;;  %v979_v13 = vpop.trf.xlu1  ;;  %v2795_v9 = vld [vmem:[%s3663_s1 + $0x388] sm:$0xff]   ;;  %p2800_p13 = pnand %p2799_p12, %p2939_p4  ;;  %p2807_p3 = por %p2806_p2, %p2805_p1 }
  0xff   : > { %1084 = vxpose.xlu0.c.b16.cont [2/8] (narrow) %v830_v4, 16  ;;  %2064 = vmatmul.mubr.bf16.vlgmr.msra.gmra.mxu0 %v979_v13  ;;  %v2790_v4 = vld [vmem:[%s3663_s1 + $0x3d8] sm:$0xff]  }
 0x100   : > { %1068 = vxpose.xlu1.c.b16.cont [2/8] (narrow) %v822_v5, 16  ;;  %2570 = vmatpush3.bf16.msra.mxu0 %v2767_v8  ;;  %v2791_v5 = vld [vmem:[%s3663_s1 + $0x398] sm:$0xff]   ;;  %v2794_v8 = vld [vmem:[%s3663_s1 + $0x3c8] sm:$0xff]   ;;  %p2801_p0 = pneg %p2800_p13 }
 0x101   : > { %2571 = vmatprep.subr.bf16.mxu0 %v2768_v12 }
 0x102   : > { %p2808_p5 = pnand %p2807_p3, %p2801_p0 }
 0x103   : > { %1085 = vxpose.xlu0.c.b16.cont [3/8] (narrow) %v831_v14, 16 }
 0x104   : > { %1069 = vxpose.xlu1.c.b16.cont [3/8] (narrow) %v823_v15, 16  ;;  %2572 = vmatpush3.bf16.msra.mxu0 %v2769_v18 }
 0x105   : > { %2573 = vmatprep.subr.bf16.mxu0 %v2770_v21 }
 0x107   : > { %1086 = vxpose.xlu0.c.b16.cont [4/8] (narrow) %v832_v22, 16 }
 0x108   : > { %1070 = vxpose.xlu1.c.b16.cont [4/8] (narrow) %v824_v23, 16  ;;  %2574 = vmatpush3.bf16.msra.mxu0 %v2771_v26 }
 0x109   : > { %2575 = vmatprep.subr.bf16.mxu0 %v2772_v29 }
 0x10b   : > { %1087 = vxpose.xlu0.c.b16.cont [5/8] (narrow) %v833_v30, 16 }
 0x10c   : > { %1071 = vxpose.xlu1.c.b16.cont [5/8] (narrow) %v825_v31, 16  ;;  %2576 = vmatpush3.bf16.msra.mxu0 %v2773_v34 }
 0x10d   : > { %2577 = vmatprep.subr.bf16.mxu0 %v2774_v37 }
 0x10f   : > { %1088 = vxpose.xlu0.c.b16.cont [6/8] (narrow) %v834_v38, 16 }
 0x110   : > { %1072 = vxpose.xlu1.c.b16.cont [6/8] (narrow) %v826_v39, 16  ;;  %2578 = vmatpush3.bf16.msra.mxu0 %v2775_v42 }
 0x111   : > { %2579 = vmatprep.subr.bf16.mxu0 %v2776_v45 }
 0x113   : > { %1089 = vxpose.xlu0.c.b16.cont [7/8] (narrow) %v835_v46, 16 }
 0x114   : > { %1073 = vxpose.xlu1.c.b16.cont [7/8] (narrow) %v827_v47, 16  ;;  %2580 = vmatpush3.bf16.msra.mxu0 %v2777_v50 }
 0x115   : > { %2581 = vmatprep.subr.bf16.mxu0 %v2778_v53 }
 0x117   : > { %1090 = vxpose.xlu0.c.b16.end [8/8] (narrow) %v836_v54, 16 }
 0x118   : > { %1074 = vxpose.xlu1.c.b16.end [8/8] (narrow) %v828_v55, 16  ;;  %2582 = vmatpush3.bf16.msra.mxu0 %v2779_v56 }
 0x119   : > { %2583 = vmatprep.subr.bf16.mxu0 %v2780_v57 }
 0x11c   : > { %2584 = vmatpush3.bf16.msra.mxu0 %v2781_v58 }
 0x11d   : > { %v1027_v60 = vpop.trf.xlu0 }
 0x11e   : > { %2104 = vmatprep.mubr.bf16.mxu1 %v1027_v60  ;;  %v1011_v62 = vpop.trf.xlu1 }
 0x11f   : > { %2105 = vmatmul.mubr.bf16.vlgmr.msra.gmra.mxu1 %v1011_v62 }
 0x120   : > { %2592 = vmatpush3.bf16.msra.mxu1 %v2783_v59 }
 0x121   : > { %2593 = vmatprep.subr.bf16.mxu1 %v2784_v61 }
 0x124   : > { %2594 = vmatpush3.bf16.msra.mxu1 %v2785_v63 }
 0x125   : > { %2595 = vmatprep.subr.bf16.mxu1 %v2786_v0 }
 0x128   : > { %2596 = vmatpush3.bf16.msra.mxu1 %v2787_v1 }
 0x129   : > { %2597 = vmatprep.subr.bf16.mxu1 %v2788_v2 }
 0x12c   : > { %2598 = vmatpush3.bf16.msra.mxu1 %v2789_v3 }
 0x12d   : > { %2599 = vmatprep.subr.bf16.mxu1 %v2790_v4 }
 0x130   : > { %2600 = vmatpush3.bf16.msra.mxu1 %v2791_v5 }
 0x131   : > { %2601 = vmatprep.subr.bf16.mxu1 %v2792_v6 }
 0x134   : > { %2602 = vmatpush3.bf16.msra.mxu1 %v2793_v7 }
 0x135   : > { %2603 = vmatprep.subr.bf16.mxu1 %v2794_v8 }
 0x138   : > { %2604 = vmatpush3.bf16.msra.mxu1 %v2795_v9 }
 0x139   : > { %2605 = vmatprep.subr.bf16.mxu1 %v2796_v10 }
 0x13c   : > { %2606 = vmatpush3.bf16.msra.mxu1 %v2797_v11 }
 0x13d   : > { %v1059_v12 = vpop.trf.xlu0 }
 0x13e   : > { %2145 = vmatprep.mubr.bf16.mxu0 %v1059_v12  ;;  %v1043_v13 = vpop.trf.xlu1 }
 0x13f   : > { %2146 = vmatmul.mubr.bf16.vlgmr.msra.gmra.mxu0 %v1043_v13  ;;  %v2453_v16 = vpop.f32.mrf.mxu0 }
 0x141   : > { %v2454_v17 = vpop.f32.mrf.mxu0 }
 0x142   : > { %v2455_v32 = vadd.f32 %v2454_v17, %v2453_v16 }
 0x143   : > { %v2456_v18 = vpop.f32.mrf.mxu0 }
 0x144   : > { %v1902_v36 = vadd.f32 %v2455_v32, %v2301_v33 }
 0x145   : > { %v2457_v19 = vpop.f32.mrf.mxu0 }
 0x146   : > { %v2458_v37 = vadd.f32 %v2457_v19, %v2456_v18 }
 0x148   : > { %v1905_v42 = vadd.f32 %v2458_v37, %v2301_v33 }
 0x15d   : > { %v1091_v14 = vpop.trf.xlu0 }
 0x15e   : > { %2186 = vmatprep.mubr.bf16.mxu1 %v1091_v14  ;;  %v1075_v15 = vpop.trf.xlu1 }
 0x15f   : > { %2187 = vmatmul.mubr.bf16.vlgmr.msra.gmra.mxu1 %v1075_v15  ;;  %v2475_v20 = vpop.f32.mrf.mxu1 }
 0x161   : > { %v2476_v22 = vpop.f32.mrf.mxu1 }
 0x162   : > { %v2477_v38 = vadd.f32 %v2476_v22, %v2475_v20 }
 0x163   : > { %v2478_v24 = vpop.f32.mrf.mxu1 }
 0x164   : > { %v1943_v43 = vadd.f32 %v2477_v38, %v1902_v36 }
 0x165   : > { %v2479_v26 = vpop.f32.mrf.mxu1 }
 0x166   : > { %v2480_v45 = vadd.f32 %v2479_v26, %v2478_v24 }
 0x168   : > { %v1946_v49 = vadd.f32 %v2480_v45, %v1905_v42 }
 0x17f   : > { %v2497_v21 = vpop.f32.mrf.mxu0 }
 0x181   : > { %v2498_v23 = vpop.f32.mrf.mxu0 }
 0x182   : > { %v2499_v44 = vadd.f32 %v2498_v23, %v2497_v21 }
 0x183   : > { %v2500_v25 = vpop.f32.mrf.mxu0 }
 0x184   : > { %v1984_v48 = vadd.f32 %v2499_v44, %v1943_v43 }
 0x185   : > { %v2501_v27 = vpop.f32.mrf.mxu0 }
 0x186   : > { %v2502_v50 = vadd.f32 %v2501_v27, %v2500_v25 }
 0x188   : > { %v1987_v54 = vadd.f32 %v2502_v50, %v1946_v49 }
 0x19f   : > { %v2519_v28 = vpop.f32.mrf.mxu1 }
 0x1a1   : > { %v2520_v30 = vpop.f32.mrf.mxu1 }
 0x1a2   : > { %v2521_v51 = vadd.f32 %v2520_v30, %v2519_v28 }
 0x1a3   : > { %v2522_v34 = vpop.f32.mrf.mxu1 }
 0x1a4   : > { %v2025_v55 = vadd.f32 %v2521_v51, %v1984_v48 }
 0x1a5   : > { %v2523_v39 = vpop.f32.mrf.mxu1 }
 0x1a6   : > { %v2524_v57 = vadd.f32 %v2523_v39, %v2522_v34 }
 0x1a8   : > { %v2028_v62 = vadd.f32 %v2524_v57, %v1987_v54 }
 0x1bf   : > { %v2541_v29 = vpop.f32.mrf.mxu0 }
 0x1c1   : > { %v2542_v31 = vpop.f32.mrf.mxu0 }
 0x1c2   : > { %v2543_v56 = vadd.f32 %v2542_v31, %v2541_v29 }
 0x1c3   : > { %v2544_v35 = vpop.f32.mrf.mxu0 }
 0x1c4   : > { %v2066_v61 = vadd.f32 %v2543_v56, %v2025_v55 }
 0x1c5   : > { %v2545_v40 = vpop.f32.mrf.mxu0 }
 0x1c6   : > { %v2546_v63 = vadd.f32 %v2545_v40, %v2544_v35 }
 0x1c8   : > { %v2069_v6 = vadd.f32 %v2546_v63, %v2028_v62 }
 0x1df   : > { %v2563_v41 = vpop.f32.mrf.mxu1 }
 0x1e1   : > { %v2564_v47 = vpop.f32.mrf.mxu1 }
 0x1e2   : > { %v2565_v59 = vadd.f32 %v2564_v47, %v2563_v41 }
 0x1e3   : > { %v2566_v53 = vpop.f32.mrf.mxu1 }
 0x1e4   : > { %v2107_v3 = vadd.f32 %v2565_v59, %v2066_v61 }
 0x1e5   : > { %v2567_v60 = vpop.f32.mrf.mxu1 }
 0x1e6   : > { %v2568_v4 = vadd.f32 %v2567_v60, %v2566_v53 }
 0x1e8   : > { %v2110_v11 = vadd.f32 %v2568_v4, %v2069_v6 }
 0x1ff   : > { %v2585_v46 = vpop.f32.mrf.mxu0 }
 0x201   : > { %v2586_v52 = vpop.f32.mrf.mxu0 }
 0x202   : > { %v2587_v0 = vadd.f32 %v2586_v52, %v2585_v46 }
 0x203   : > { %v2588_v58 = vpop.f32.mrf.mxu0 }
 0x204   : > { %v2148_v7 = vadd.f32 %v2587_v0, %v2107_v3 }
 0x205   : > { %v2589_v1 = vpop.f32.mrf.mxu0 }
 0x206   : > { %v2590_v8 = vadd.f32 %v2589_v1, %v2588_v58 }
 0x208   : > { %v2151_v14 = vadd.f32 %v2590_v8, %v2110_v11 }
 0x21f   : > { %v2607_v2 = vpop.f32.mrf.mxu1 }
 0x221   : > { %v2608_v5 = vpop.f32.mrf.mxu1 }
 0x222   : > { %v2609_v9 = vadd.f32 %v2608_v5, %v2607_v2 }
 0x223   : > { %v2610_v10 = vpop.f32.mrf.mxu1 }
 0x224   : > { %v2189_v12 = vadd.f32 %v2609_v9, %v2148_v7 }
 0x225   : > { %v2611_v13 = vpop.f32.mrf.mxu1 }
 0x226   : > { %2196 = vst.msk [vmem:[%s185_s5] sm:$0xff] %vm2195_vm0, %v2189_v12  ;;  %v2612_v15 = vadd.f32 %v2611_v13, %v2610_v10 }
 0x228   : > { %v2192_v16 = vadd.f32 %v2612_v15, %v2151_v14 }
 0x22a   : > { %2197 = vst.msk [vmem:[%s185_s5 + $0x8] sm:$0xff] %vm2195_vm0, %v2192_v16 }
 0x22b   : > { %2811 = shalt.err (!%p2808_p5)
}
 0x22c   : > { %s2812_s23 = scalar_lea.hbm %s3611_s10, 256  ;;  %s2816_s28 = scalar_lea.hbm %s3665_s3, 512 }
 0x22d   : > { %p2813_p6 = scmp.ne.s32.totalorder %s3611_s10, %s2812_s23  ;;  %p2817_p10 = scmp.lt.s32.totalorder %s3611_s10, %s3665_s3 }
 0x22e   : > { %p2818_p11 = scmp.lt.s32.totalorder %s2816_s28, %s2812_s23 }
 0x22f   : > { %p2814_p7 = pnand %p2813_p6, %p2939_p4 }
 0x230   : > { %p2819_p12 = por %p2818_p11, %p2817_p10 }
 0x231   : > { %p2815_p9 = pneg %p2814_p7 }
 0x233   : > { %p2820_p13 = pnand %p2819_p12, %p2815_p9 }
 0x235   : > { %2823 = shalt.err (!%p2820_p13)
}
 0x236   : > { %s2877_s4 = smov 128   ;;  %s2878_s5 = smov 8  }
 0x237   : > { %2613 = dma.vmem_to_hbm [thread:$0]  (%p2939_p4), %s3613_s6, 256, %s3611_s10, %s3617_s11, %s2877_s4, %s2877_s4, %s2878_s5  }
 0x238 PF: > { %p2619_p0 = scmp.ge.s32.totalorder %s2874_s17, 2  ;;  %s2229_s7 = sand.u32 1, %s2854_s12  }
 0x239   : > { %s2230_s8 = scalar_lea.sflag [#allocation3], %s2229_s7 }
 0x23a   : > { %p2616_p1 = pnand %p2619_p0, %p2946_p8 }
 0x23c   : > { %p2617_p2 = pneg %p2616_p1 }
 0x23e   : > { %2849 = dma.done.wait (%p2617_p2), %s2230_s8, 256  }
 0x23f   : > { %2851 = vsyncadd (%p2617_p2), %s2230_s8, 4294967040  ;;  %s16_s17 = sadd.s32 1, %s2874_s17   ;;  %s3668_s12 = smov %s2858_s13 }
 0x240   : > { %p13_p3 = scmp.ge.s32.totalorder %s16_s17, 4   ;;  %s3669_s13 = smov %s2862_s14 }
 0x241   : > { %s3670_s14 = smov %s2952_s25  ;;  %s3671_s15 = smov %s2870_s16 }
 0x242   : > { %s3672_s16 = smov %s3674_s20  ;;  %15 = sbr.rel (!%p13_p3) target bundleno = 4 (0x4), region = 67 }
 0x247   :  { %2235 = vsyncpa [#allocation3], 1 }
 0x248   :  { %2237 = vsyncpa [#allocation3 + $0x1], 1 }

</bundles_post_ra>
